<compile_context>
chip_gen: v5e
topology: v5e:2x2
jax: 0.10.0
libtpu: 0.0.40
codegen_flags: <defaults>
</compile_context>

<pallas_src>
import functools

import jax
import jax.numpy as jnp
from jax.experimental import pallas as pl
from jax.experimental.pallas import tpu as pltpu


def _sigmoid(x):
    # sigmoid(x) == 0.5 * tanh(0.5 * x) + 0.5 : one EUP push instead of exp + reciprocal.
    return 0.5 * jnp.tanh(0.5 * x) + 0.5


# -----------------------------------------------------------------------------
# Fused kernel: 3-layer LSTM (layer-major, gate-major weights) + batch-softmax
# attention + MLP head.
# -----------------------------------------------------------------------------
def lstm_attn_kernel(
    # inputs
    x_ref,                                     # (T, bsp, in_f) bf16, time-major, batch padded
    w_ih0_ref, w_hh0_ref, b0_ref,              # (4,in_f,H) bf16, (4,H,H) bf16, (4,1,H) f32
    w_ih1_hbm, w_hh1_hbm, b1_ref,              # layer-1 weights live in HBM (pl.ANY)
    w_ih2_hbm, w_hh2_hbm, b2_ref,              # layer-2 weights live in HBM (pl.ANY)
    fc1_w_ref, fc1_b_ref, fc2_w_ref, fc2_b_ref,
    # outputs
    out_ref,                                   # (bsp, out_f) f32
    # scratch
    xp_ref,                                    # (4, T, bsp, H) f32 : gate-major input projection
    ya_ref,                                    # (T, bsp, H) bf16   : layer output ping
    yb_ref,                                    # (T, bsp, H) bf16   : layer output pong
    w_ih1_vmem, w_hh1_vmem,                    # (4,H,H) bf16 prefetch targets
    w_ih2_vmem, w_hh2_vmem,
    dma_sem,                                   # DMA semaphores (4,)
    *,
    bs_real,
):
    T, bsp, _ = x_ref.shape
    H = w_hh0_ref.shape[1]

    # ---- kick off layer-1/2 weight prefetch; overlaps with all of layer-0 compute ----
    cp_ih1 = pltpu.make_async_copy(w_ih1_hbm, w_ih1_vmem, dma_sem.at[0])
    cp_hh1 = pltpu.make_async_copy(w_hh1_hbm, w_hh1_vmem, dma_sem.at[1])
    cp_ih2 = pltpu.make_async_copy(w_ih2_hbm, w_ih2_vmem, dma_sem.at[2])
    cp_hh2 = pltpu.make_async_copy(w_hh2_hbm, w_hh2_vmem, dma_sem.at[3])
    cp_ih1.start(); cp_hh1.start(); cp_ih2.start(); cp_hh2.start()

    # T-chunked input projection: ~256 rows per dot keeps the f32 temporary to a few MiB while
    # keeping the MXU well fed (chunk*bsp >= 256 at production bsp=64).
    t_chunk = max(1, min(T, (256 + bsp - 1) // bsp))
    n_chunks = (T + t_chunk - 1) // t_chunk

    def input_projection(src_ref, w_ih_ref, b_ref):
        in_dim = src_ref.shape[-1]
        for ci in range(n_chunks):
            t0 = ci * t_chunk
            csz = min(t_chunk, T - t0)
            src = src_ref[pl.ds(t0, csz)].reshape(csz * bsp, in_dim)      # bf16
            for k in range(4):
                acc = jnp.dot(src, w_ih_ref[k], preferred_element_type=jnp.float32)
                acc = acc + b_ref[k]                                      # (1,H) f32 bias
                xp_ref[k, pl.ds(t0, csz)] = acc.reshape(csz, bsp, H)

    def recurrence(w_hh_ref, y_ref):
        def step(t, carry):
            h_bf, c = carry                        # (bsp,H) bf16 / f32 loop carries

            def gate(k):
                return xp_ref[k, t] + jnp.dot(h_bf, w_hh_ref[k],
                                              preferred_element_type=jnp.float32)

            # PyTorch gate order i, f, g, o; each gate finished before the next so the live
            # intermediate stays (bsp, H) instead of (bsp, 4H).
            i = _sigmoid(gate(0))
            f = _sigmoid(gate(1))
            c = f * c
            g = jnp.tanh(gate(2))
            c = c + i * g
            o = _sigmoid(gate(3))
            h_bf = (o * jnp.tanh(c)).astype(jnp.bfloat16)
            y_ref[t] = h_bf
            return h_bf, c

        h0 = jnp.zeros((bsp, H), jnp.bfloat16)
        c0 = jnp.zeros((bsp, H), jnp.float32)
        jax.lax.fori_loop(0, T, step, (h0, c0))

    # ---- 3-layer LSTM, layer-major ----
    input_projection(x_ref, w_ih0_ref, b0_ref)
    recurrence(w_hh0_ref, ya_ref)

    cp_ih1.wait()
    input_projection(ya_ref, w_ih1_vmem, b1_ref)
    cp_hh1.wait()
    recurrence(w_hh1_vmem, yb_ref)

    cp_ih2.wait()
    input_projection(yb_ref, w_ih2_vmem, b2_ref)
    cp_hh2.wait()
    recurrence(w_hh2_vmem, ya_ref)             # ya_ref now holds top-layer outputs

    # ---- attention (softmax over the BATCH dim, matching F.softmax(..., dim=0)) ----
    y = ya_ref[...].astype(jnp.float32)        # (T, bsp, H)
    x_last = y[T - 1]                          # (bsp, H)
    if T != 1:
        scores = jnp.sum(y * x_last[None, :, :], axis=2)             # (T, bsp)
        if bs_real < bsp:
            # Padded rows would otherwise perturb the real rows (softmax normalizes over batch).
            b_idx = jax.lax.broadcasted_iota(jnp.int32, (T, bsp), 1)
            scores = jnp.where(b_idx < bs_real, scores, jnp.float32(-1e30))
        m = jnp.max(scores, axis=1, keepdims=True)                    # softmax over batch axis
        e = jnp.exp(scores - m)
        denom = jnp.sum(e, axis=1, keepdims=True)
        attention = e * pl.reciprocal(denom, approx=True)             # ~1e-3 rel err, documented
        attn_out = jnp.sum(y * attention[:, :, None], axis=0)         # (bsp, H)
    else:
        attn_out = x_last                      # T == 1 branch of the reference module

    # ---- f1 / ReLU / (Dropout == identity at inference) / f2 ----
    z = jnp.dot(attn_out.astype(jnp.bfloat16), fc1_w_ref[...],
                preferred_element_type=jnp.float32) + fc1_b_ref[...]
    z = jnp.maximum(z, 0.0)
    out = jnp.dot(z.astype(jnp.bfloat16), fc2_w_ref[...],
                  preferred_element_type=jnp.float32) + fc2_b_ref[...]
    out_ref[...] = out.astype(out_ref.dtype)


# -----------------------------------------------------------------------------
# Wrapper
# -----------------------------------------------------------------------------
def _gate_major_w(w):
    # (in_dim, 4H) -> (4, in_dim, H) bf16, gate-major (PyTorch order i, f, g, o).
    in_dim, g = w.shape
    h = g // 4
    return jnp.transpose(w.reshape(in_dim, 4, h), (1, 0, 2)).astype(jnp.bfloat16)


def _gate_major_b(b):
    # (1, 4H) -> (4, 1, H) f32.
    h = b.shape[1] // 4
    return jnp.transpose(b.reshape(1, 4, h), (1, 0, 2)).astype(jnp.float32)


@jax.jit
def lstm_attn_forward(x, params):
    bs, T, in_f = x.shape
    H = params["w_hh0"].shape[0]
    out_f = params["fc2_w"].shape[1]

    bsp = ((bs + 7) // 8) * 8                                      # pad batch to sublane count

    x_tb = jnp.transpose(x, (1, 0, 2)).astype(jnp.bfloat16)       # (T, bs, in_f), bf16
    if bsp != bs:
        x_tb = jnp.pad(x_tb, ((0, 0), (0, bsp - bs), (0, 0)))

    vmem = pl.BlockSpec(memory_space=pltpu.MemorySpace.VMEM)
    hbm = pl.BlockSpec(memory_space=pl.ANY)
    kernel = functools.partial(lstm_attn_kernel, bs_real=bs)

    out = pl.pallas_call(
        kernel,
        out_shape=jax.ShapeDtypeStruct((bsp, out_f), jnp.float32),
        in_specs=[vmem,                       # x
                  vmem, vmem, vmem,           # layer 0 (needed immediately)
                  hbm, hbm, vmem,             # layer 1 weights prefetched in-kernel
                  hbm, hbm, vmem,             # layer 2 weights prefetched in-kernel
                  vmem, vmem, vmem, vmem],    # MLP head
        out_specs=vmem,
        scratch_shapes=[
            pltpu.VMEM((4, T, bsp, H), jnp.float32),   # gate-major input projection
            pltpu.VMEM((T, bsp, H), jnp.bfloat16),     # layer output ping (bf16)
            pltpu.VMEM((T, bsp, H), jnp.bfloat16),     # layer output pong (bf16)
            pltpu.VMEM((4, H, H), jnp.bfloat16),       # prefetched w_ih1
            pltpu.VMEM((4, H, H), jnp.bfloat16),       # prefetched w_hh1
            pltpu.VMEM((4, H, H), jnp.bfloat16),       # prefetched w_ih2
            pltpu.VMEM((4, H, H), jnp.bfloat16),       # prefetched w_hh2
            pltpu.SemaphoreType.DMA((4,)),
        ],
        # ~40 MiB resident at production shapes (H=512, T=32, bs=64); 48 MiB overrides v5e's
        # 16 MiB scoped default while leaving headroom below v7x's 64 MiB physical VMEM.
        compiler_params=pltpu.CompilerParams(vmem_limit_bytes=48 * 1024 * 1024),
    )(x_tb,
      _gate_major_w(params["w_ih0"]), _gate_major_w(params["w_hh0"]), _gate_major_b(params["b0"]),
      _gate_major_w(params["w_ih1"]), _gate_major_w(params["w_hh1"]), _gate_major_b(params["b1"]),
      _gate_major_w(params["w_ih2"]), _gate_major_w(params["w_hh2"]), _gate_major_b(params["b2"]),
      params["fc1_w"].astype(jnp.bfloat16), params["fc1_b"].astype(jnp.float32),
      params["fc2_w"].astype(jnp.bfloat16), params["fc2_b"].astype(jnp.float32))

    return out[:bs]                                                # == x.view(bs, -1)


# -----------------------------------------------------------------------------
# Pure-JAX reference mirroring the kernel's precision choices (bf16 matmuls, bf16 y).
# -----------------------------------------------------------------------------
def lstm_attn_reference(x, params):
    bs, T, _ = x.shape
    H = params["w_hh0"].shape[0]
    bf = lambda a: a.astype(jnp.bfloat16)

    def run_layer(seq, w_ih, w_hh, b):
        in_dim = seq.shape[-1]
        xp = jnp.dot(bf(seq).reshape(T * bs, in_dim), bf(w_ih),
                     preferred_element_type=jnp.float32).reshape(T, bs, 4 * H) + b[0]

        def step(carry, xpt):
            h_bf, c = carry
            g = xpt + jnp.dot(h_bf, bf(w_hh), preferred_element_type=jnp.float32)
            i = jax.nn.sigmoid(g[:, :H])
            f = jax.nn.sigmoid(g[:, H:2 * H])
            gg = jnp.tanh(g[:, 2 * H:3 * H])
            o = jax.nn.sigmoid(g[:, 3 * H:])
            c = f * c + i * gg
            h_bf = (o * jnp.tanh(c)).astype(jnp.bfloat16)
            return (h_bf, c), h_bf

        init = (jnp.zeros((bs, H), jnp.bfloat16), jnp.zeros((bs, H), jnp.float32))
        _, ys = jax.lax.scan(step, init, xp)
        return ys                                                  # (T, bs, H) bf16

    seq = jnp.transpose(x, (1, 0, 2))
    seq = run_layer(seq, params["w_ih0"], params["w_hh0"], params["b0"])
    seq = run_layer(seq, params["w_ih1"], params["w_hh1"], params["b1"])
    y = run_layer(seq, params["w_ih2"], params["w_hh2"], params["b2"]).astype(jnp.float32)

    x_last = y[-1]
    if T != 1:
        scores = jnp.einsum("tbh,bh->tb", y, x_last)
        attention = jax.nn.softmax(scores, axis=1)     # axis=1 == batch dim (dim=0 in torch)
        attn_out = jnp.einsum("tbh,tb->bh", y, attention)
    else:
        attn_out = x_last
    z = jnp.maximum(jnp.dot(bf(attn_out), bf(params["fc1_w"]),
                            preferred_element_type=jnp.float32) + params["fc1_b"][0], 0.0)
    out = jnp.dot(bf(z), bf(params["fc2_w"]),
                  preferred_element_type=jnp.float32) + params["fc2_b"][0]
    return out.reshape(bs, -1)


# -----------------------------------------------------------------------------
# Deterministic parameter init (PyTorch-style U(-1/sqrt(H), 1/sqrt(H)))
# -----------------------------------------------------------------------------
def init_params(key, in_f, H, out_f, mlp_hidden=64):
    bound = 1.0 / jnp.sqrt(jnp.float32(H))
    keys = jax.random.split(key, 16)
    u = lambda k, shape: jax.random.uniform(k, shape, jnp.float32, -bound, bound)
    return {
        "w_ih0": u(keys[0], (in_f, 4 * H)),
        "w_hh0": u(keys[1], (H, 4 * H)),
        "b0":    u(keys[2], (1, 4 * H)),       # b_ih + b_hh combined
        "w_ih1": u(keys[3], (H, 4 * H)),
        "w_hh1": u(keys[4], (H, 4 * H)),
        "b1":    u(keys[5], (1, 4 * H)),
        "w_ih2": u(keys[6], (H, 4 * H)),
        "w_hh2": u(keys[7], (H, 4 * H)),
        "b2":    u(keys[8], (1, 4 * H)),
        # f1: Linear(H, 64), f2: Linear(64, out_f)  (module hardcodes 512 -> H here)
        "fc1_w": u(keys[9], (H, mlp_hidden)),
        "fc1_b": u(keys[10], (1, mlp_hidden)),
        "fc2_w": u(keys[11], (mlp_hidden, out_f)),
        "fc2_b": u(keys[12], (1, out_f)),
    }


if __name__ == "__main__":
    bs, T, in_f, H, out_f = 2, 8, 16, 32, 4

    key = jax.random.PRNGKey(0)
    kx, kp = jax.random.split(key)
    x = jax.random.normal(kx, (bs, T, in_f), jnp.float32)
    params = init_params(kp, in_f, H, out_f)

    out = jax.block_until_ready(lstm_attn_forward(x, params))
    ref = lstm_attn_reference(x, params)

    assert out.shape == (bs, out_f)
    err = float(jnp.max(jnp.abs(out - ref)))
    assert err < 1e-2, f"mismatch vs JAX reference: {err}"

    print("KERNEL_OK")
</pallas_src>

<mosaic_0001>
module attributes {stable_mosaic.version = 11 : i64} {
  func.func @lstm_attn_kernel(%arg0: memref<8x8x16xbf16, #tpu.memory_space<vmem>>, %arg1: memref<4x16x32xbf16, #tpu.memory_space<vmem>>, %arg2: memref<4x32x32xbf16, #tpu.memory_space<vmem>>, %arg3: memref<4x1x32xf32, #tpu.memory_space<vmem>>, %arg4: memref<4x32x32xbf16, #tpu.memory_space<any>>, %arg5: memref<4x32x32xbf16, #tpu.memory_space<any>>, %arg6: memref<4x1x32xf32, #tpu.memory_space<vmem>>, %arg7: memref<4x32x32xbf16, #tpu.memory_space<any>>, %arg8: memref<4x32x32xbf16, #tpu.memory_space<any>>, %arg9: memref<4x1x32xf32, #tpu.memory_space<vmem>>, %arg10: memref<32x64xbf16, #tpu.memory_space<vmem>>, %arg11: memref<1x64xf32, #tpu.memory_space<vmem>>, %arg12: memref<64x4xbf16, #tpu.memory_space<vmem>>, %arg13: memref<1x4xf32, #tpu.memory_space<vmem>>, %arg14: memref<8x4xf32, #tpu.memory_space<vmem>>, %arg15: memref<4x8x8x32xf32, #tpu.memory_space<vmem>>, %arg16: memref<8x8x32xbf16, #tpu.memory_space<vmem>>, %arg17: memref<8x8x32xbf16, #tpu.memory_space<vmem>>, %arg18: memref<4x32x32xbf16, #tpu.memory_space<vmem>>, %arg19: memref<4x32x32xbf16, #tpu.memory_space<vmem>>, %arg20: memref<4x32x32xbf16, #tpu.memory_space<vmem>>, %arg21: memref<4x32x32xbf16, #tpu.memory_space<vmem>>, %arg22: memref<4x!tpu.dma_semaphore, #tpu.memory_space<semaphore_mem>>) attributes {dimension_semantics = [], scalar_prefetch = 0 : i64, scratch_operands = 8 : i64, tpu.core_type = #tpu.core_type<tc>} {
    %c0_i32 = arith.constant 0 : i32
    %0 = tpu.memref_slice %arg22[%c0_i32] : memref<4x!tpu.dma_semaphore, #tpu.memory_space<semaphore_mem>> -> memref<1x!tpu.dma_semaphore, #tpu.memory_space<semaphore_mem>>
    %1 = tpu.memref_squeeze %0 : memref<1x!tpu.dma_semaphore, #tpu.memory_space<semaphore_mem>> -> memref<!tpu.dma_semaphore, #tpu.memory_space<semaphore_mem>>
    tpu.enqueue_dma source(%arg4 : memref<4x32x32xbf16, #tpu.memory_space<any>>) target(%arg18 : memref<4x32x32xbf16, #tpu.memory_space<vmem>>) target_semaphore(%1 : memref<!tpu.dma_semaphore, #tpu.memory_space<semaphore_mem>>)
    %c1_i32 = arith.constant 1 : i32
    %2 = tpu.memref_slice %arg22[%c1_i32] : memref<4x!tpu.dma_semaphore, #tpu.memory_space<semaphore_mem>> -> memref<1x!tpu.dma_semaphore, #tpu.memory_space<semaphore_mem>>
    %3 = tpu.memref_squeeze %2 : memref<1x!tpu.dma_semaphore, #tpu.memory_space<semaphore_mem>> -> memref<!tpu.dma_semaphore, #tpu.memory_space<semaphore_mem>>
    tpu.enqueue_dma source(%arg5 : memref<4x32x32xbf16, #tpu.memory_space<any>>) target(%arg19 : memref<4x32x32xbf16, #tpu.memory_space<vmem>>) target_semaphore(%3 : memref<!tpu.dma_semaphore, #tpu.memory_space<semaphore_mem>>)
    %c2_i32 = arith.constant 2 : i32
    %4 = tpu.memref_slice %arg22[%c2_i32] : memref<4x!tpu.dma_semaphore, #tpu.memory_space<semaphore_mem>> -> memref<1x!tpu.dma_semaphore, #tpu.memory_space<semaphore_mem>>
    %5 = tpu.memref_squeeze %4 : memref<1x!tpu.dma_semaphore, #tpu.memory_space<semaphore_mem>> -> memref<!tpu.dma_semaphore, #tpu.memory_space<semaphore_mem>>
    tpu.enqueue_dma source(%arg7 : memref<4x32x32xbf16, #tpu.memory_space<any>>) target(%arg20 : memref<4x32x32xbf16, #tpu.memory_space<vmem>>) target_semaphore(%5 : memref<!tpu.dma_semaphore, #tpu.memory_space<semaphore_mem>>)
    %c3_i32 = arith.constant 3 : i32
    %6 = tpu.memref_slice %arg22[%c3_i32] : memref<4x!tpu.dma_semaphore, #tpu.memory_space<semaphore_mem>> -> memref<1x!tpu.dma_semaphore, #tpu.memory_space<semaphore_mem>>
    %7 = tpu.memref_squeeze %6 : memref<1x!tpu.dma_semaphore, #tpu.memory_space<semaphore_mem>> -> memref<!tpu.dma_semaphore, #tpu.memory_space<semaphore_mem>>
    tpu.enqueue_dma source(%arg8 : memref<4x32x32xbf16, #tpu.memory_space<any>>) target(%arg21 : memref<4x32x32xbf16, #tpu.memory_space<vmem>>) target_semaphore(%7 : memref<!tpu.dma_semaphore, #tpu.memory_space<semaphore_mem>>)
    %c0 = arith.constant 0 : index
    %c0_0 = arith.constant 0 : index
    %c0_1 = arith.constant 0 : index
    %8 = vector.load %arg0[%c0, %c0_0, %c0_1] : memref<8x8x16xbf16, #tpu.memory_space<vmem>>, vector<8x8x16xbf16>
    %9 = vector.shape_cast %8 : vector<8x8x16xbf16> to vector<64x16xbf16>
    %c0_2 = arith.constant 0 : index
    %c0_3 = arith.constant 0 : index
    %c0_4 = arith.constant 0 : index
    %10 = vector.load %arg1[%c0_2, %c0_3, %c0_4] : memref<4x16x32xbf16, #tpu.memory_space<vmem>>, vector<1x16x32xbf16>
    %11 = vector.shape_cast %10 : vector<1x16x32xbf16> to vector<16x32xbf16>
    %cst = arith.constant dense<0.000000e+00> : vector<64x32xf32>
    %12 = tpu.matmul %9, %11, %cst {dimension_numbers = #tpu.dot_dimension_numbers<[1], [0], [0], [1], [0, 0, 1, 1], [], []>} : vector<64x16xbf16>, vector<16x32xbf16>, vector<64x32xf32> -> vector<64x32xf32>
    %c0_5 = arith.constant 0 : index
    %c0_6 = arith.constant 0 : index
    %c0_7 = arith.constant 0 : index
    %13 = vector.load %arg3[%c0_5, %c0_6, %c0_7] : memref<4x1x32xf32, #tpu.memory_space<vmem>>, vector<1x1x32xf32>
    %14 = vector.shape_cast %13 : vector<1x1x32xf32> to vector<1x32xf32>
    %15 = vector.broadcast %14 : vector<1x32xf32> to vector<64x32xf32>
    %16 = arith.addf %12, %15 : vector<64x32xf32>
    %17 = vector.shape_cast %16 : vector<64x32xf32> to vector<8x8x32xf32>
    %c0_8 = arith.constant 0 : index
    %c0_9 = arith.constant 0 : index
    %c0_10 = arith.constant 0 : index
    %c0_11 = arith.constant 0 : index
    %18 = vector.load %arg15[%c0_8, %c0_9, %c0_10, %c0_11] : memref<4x8x8x32xf32, #tpu.memory_space<vmem>>, vector<1x8x8x32xf32>
    %19 = vector.shape_cast %18 : vector<1x8x8x32xf32> to vector<8x8x32xf32>
    %20 = vector.shape_cast %17 : vector<8x8x32xf32> to vector<1x8x8x32xf32>
    tpu.vector_store %arg15[%c0_8, %c0_9, %c0_10, %c0_11], %20 {strides = array<i32>} : memref<4x8x8x32xf32, #tpu.memory_space<vmem>>, vector<1x8x8x32xf32>,
    %c1 = arith.constant 1 : index
    %c0_12 = arith.constant 0 : index
    %c0_13 = arith.constant 0 : index
    %21 = vector.load %arg1[%c1, %c0_12, %c0_13] : memref<4x16x32xbf16, #tpu.memory_space<vmem>>, vector<1x16x32xbf16>
    %22 = vector.shape_cast %21 : vector<1x16x32xbf16> to vector<16x32xbf16>
    %cst_14 = arith.constant dense<0.000000e+00> : vector<64x32xf32>
    %23 = tpu.matmul %9, %22, %cst_14 {dimension_numbers = #tpu.dot_dimension_numbers<[1], [0], [0], [1], [0, 0, 1, 1], [], []>} : vector<64x16xbf16>, vector<16x32xbf16>, vector<64x32xf32> -> vector<64x32xf32>
    %c1_15 = arith.constant 1 : index
    %c0_16 = arith.constant 0 : index
    %c0_17 = arith.constant 0 : index
    %24 = vector.load %arg3[%c1_15, %c0_16, %c0_17] : memref<4x1x32xf32, #tpu.memory_space<vmem>>, vector<1x1x32xf32>
    %25 = vector.shape_cast %24 : vector<1x1x32xf32> to vector<1x32xf32>
    %26 = vector.broadcast %25 : vector<1x32xf32> to vector<64x32xf32>
    %27 = arith.addf %23, %26 : vector<64x32xf32>
    %28 = vector.shape_cast %27 : vector<64x32xf32> to vector<8x8x32xf32>
    %c1_18 = arith.constant 1 : index
    %c0_19 = arith.constant 0 : index
    %c0_20 = arith.constant 0 : index
    %c0_21 = arith.constant 0 : index
    %29 = vector.load %arg15[%c1_18, %c0_19, %c0_20, %c0_21] : memref<4x8x8x32xf32, #tpu.memory_space<vmem>>, vector<1x8x8x32xf32>
    %30 = vector.shape_cast %29 : vector<1x8x8x32xf32> to vector<8x8x32xf32>
    %31 = vector.shape_cast %28 : vector<8x8x32xf32> to vector<1x8x8x32xf32>
    tpu.vector_store %arg15[%c1_18, %c0_19, %c0_20, %c0_21], %31 {strides = array<i32>} : memref<4x8x8x32xf32, #tpu.memory_space<vmem>>, vector<1x8x8x32xf32>,
    %c2 = arith.constant 2 : index
    %c0_22 = arith.constant 0 : index
    %c0_23 = arith.constant 0 : index
    %32 = vector.load %arg1[%c2, %c0_22, %c0_23] : memref<4x16x32xbf16, #tpu.memory_space<vmem>>, vector<1x16x32xbf16>
    %33 = vector.shape_cast %32 : vector<1x16x32xbf16> to vector<16x32xbf16>
    %cst_24 = arith.constant dense<0.000000e+00> : vector<64x32xf32>
    %34 = tpu.matmul %9, %33, %cst_24 {dimension_numbers = #tpu.dot_dimension_numbers<[1], [0], [0], [1], [0, 0, 1, 1], [], []>} : vector<64x16xbf16>, vector<16x32xbf16>, vector<64x32xf32> -> vector<64x32xf32>
    %c2_25 = arith.constant 2 : index
    %c0_26 = arith.constant 0 : index
    %c0_27 = arith.constant 0 : index
    %35 = vector.load %arg3[%c2_25, %c0_26, %c0_27] : memref<4x1x32xf32, #tpu.memory_space<vmem>>, vector<1x1x32xf32>
    %36 = vector.shape_cast %35 : vector<1x1x32xf32> to vector<1x32xf32>
    %37 = vector.broadcast %36 : vector<1x32xf32> to vector<64x32xf32>
    %38 = arith.addf %34, %37 : vector<64x32xf32>
    %39 = vector.shape_cast %38 : vector<64x32xf32> to vector<8x8x32xf32>
    %c2_28 = arith.constant 2 : index
    %c0_29 = arith.constant 0 : index
    %c0_30 = arith.constant 0 : index
    %c0_31 = arith.constant 0 : index
    %40 = vector.load %arg15[%c2_28, %c0_29, %c0_30, %c0_31] : memref<4x8x8x32xf32, #tpu.memory_space<vmem>>, vector<1x8x8x32xf32>
    %41 = vector.shape_cast %40 : vector<1x8x8x32xf32> to vector<8x8x32xf32>
    %42 = vector.shape_cast %39 : vector<8x8x32xf32> to vector<1x8x8x32xf32>
    tpu.vector_store %arg15[%c2_28, %c0_29, %c0_30, %c0_31], %42 {strides = array<i32>} : memref<4x8x8x32xf32, #tpu.memory_space<vmem>>, vector<1x8x8x32xf32>,
    %c3 = arith.constant 3 : index
    %c0_32 = arith.constant 0 : index
    %c0_33 = arith.constant 0 : index
    %43 = vector.load %arg1[%c3, %c0_32, %c0_33] : memref<4x16x32xbf16, #tpu.memory_space<vmem>>, vector<1x16x32xbf16>
    %44 = vector.shape_cast %43 : vector<1x16x32xbf16> to vector<16x32xbf16>
    %cst_34 = arith.constant dense<0.000000e+00> : vector<64x32xf32>
    %45 = tpu.matmul %9, %44, %cst_34 {dimension_numbers = #tpu.dot_dimension_numbers<[1], [0], [0], [1], [0, 0, 1, 1], [], []>} : vector<64x16xbf16>, vector<16x32xbf16>, vector<64x32xf32> -> vector<64x32xf32>
    %c3_35 = arith.constant 3 : index
    %c0_36 = arith.constant 0 : index
    %c0_37 = arith.constant 0 : index
    %46 = vector.load %arg3[%c3_35, %c0_36, %c0_37] : memref<4x1x32xf32, #tpu.memory_space<vmem>>, vector<1x1x32xf32>
    %47 = vector.shape_cast %46 : vector<1x1x32xf32> to vector<1x32xf32>
    %48 = vector.broadcast %47 : vector<1x32xf32> to vector<64x32xf32>
    %49 = arith.addf %45, %48 : vector<64x32xf32>
    %50 = vector.shape_cast %49 : vector<64x32xf32> to vector<8x8x32xf32>
    %c3_38 = arith.constant 3 : index
    %c0_39 = arith.constant 0 : index
    %c0_40 = arith.constant 0 : index
    %c0_41 = arith.constant 0 : index
    %51 = vector.load %arg15[%c3_38, %c0_39, %c0_40, %c0_41] : memref<4x8x8x32xf32, #tpu.memory_space<vmem>>, vector<1x8x8x32xf32>
    %52 = vector.shape_cast %51 : vector<1x8x8x32xf32> to vector<8x8x32xf32>
    %53 = vector.shape_cast %50 : vector<8x8x32xf32> to vector<1x8x8x32xf32>
    tpu.vector_store %arg15[%c3_38, %c0_39, %c0_40, %c0_41], %53 {strides = array<i32>} : memref<4x8x8x32xf32, #tpu.memory_space<vmem>>, vector<1x8x8x32xf32>,
    %cst_42 = arith.constant 0.000000e+00 : bf16
    %54 = vector.broadcast %cst_42 : bf16 to vector<8x32xbf16>
    %cst_43 = arith.constant 0.000000e+00 : f32
    %55 = vector.broadcast %cst_43 : f32 to vector<8x32xf32>
    %c0_i32_44 = arith.constant 0 : i32
    %c8_i32 = arith.constant 8 : i32
    %56 = arith.addi %c0_i32_44, %c8_i32 : i32
    %c1_i32_45 = arith.constant 1 : i32
    %57:2 = scf.for %arg23 = %c0_i32_44 to %56 step %c1_i32_45 iter_args(%arg24 = %54, %arg25 = %55) -> (vector<8x32xbf16>, vector<8x32xf32>)  : i32 {
      %c0_179 = arith.constant 0 : index
      %208 = arith.index_cast %arg23 : i32 to index
      %c0_180 = arith.constant 0 : index
      %c0_181 = arith.constant 0 : index
      %209 = vector.load %arg15[%c0_179, %208, %c0_180, %c0_181] : memref<4x8x8x32xf32, #tpu.memory_space<vmem>>, vector<1x1x8x32xf32>
      %210 = vector.shape_cast %209 : vector<1x1x8x32xf32> to vector<8x32xf32>
      %c0_182 = arith.constant 0 : index
      %c0_183 = arith.constant 0 : index
      %c0_184 = arith.constant 0 : index
      %211 = vector.load %arg2[%c0_182, %c0_183, %c0_184] : memref<4x32x32xbf16, #tpu.memory_space<vmem>>, vector<1x32x32xbf16>
      %212 = vector.shape_cast %211 : vector<1x32x32xbf16> to vector<32x32xbf16>
      %cst_185 = arith.constant dense<0.000000e+00> : vector<8x32xf32>
      %213 = tpu.matmul %arg24, %212, %cst_185 {dimension_numbers = #tpu.dot_dimension_numbers<[1], [0], [0], [1], [0, 0, 1, 1], [], []>} : vector<8x32xbf16>, vector<32x32xbf16>, vector<8x32xf32> -> vector<8x32xf32>
      %214 = arith.addf %210, %213 : vector<8x32xf32>
      %cst_186 = arith.constant 5.000000e-01 : f32
      %215 = vector.broadcast %cst_186 : f32 to vector<8x32xf32>
      %216 = arith.mulf %215, %214 : vector<8x32xf32>
      %217 = math.tanh %216 : vector<8x32xf32>
      %cst_187 = arith.constant 5.000000e-01 : f32
      %218 = vector.broadcast %cst_187 : f32 to vector<8x32xf32>
      %219 = arith.mulf %218, %217 : vector<8x32xf32>
      %cst_188 = arith.constant 5.000000e-01 : f32
      %220 = vector.broadcast %cst_188 : f32 to vector<8x32xf32>
      %221 = arith.addf %219, %220 : vector<8x32xf32>
      %c1_189 = arith.constant 1 : index
      %222 = arith.index_cast %arg23 : i32 to index
      %c0_190 = arith.constant 0 : index
      %c0_191 = arith.constant 0 : index
      %223 = vector.load %arg15[%c1_189, %222, %c0_190, %c0_191] : memref<4x8x8x32xf32, #tpu.memory_space<vmem>>, vector<1x1x8x32xf32>
      %224 = vector.shape_cast %223 : vector<1x1x8x32xf32> to vector<8x32xf32>
      %c1_192 = arith.constant 1 : index
      %c0_193 = arith.constant 0 : index
      %c0_194 = arith.constant 0 : index
      %225 = vector.load %arg2[%c1_192, %c0_193, %c0_194] : memref<4x32x32xbf16, #tpu.memory_space<vmem>>, vector<1x32x32xbf16>
      %226 = vector.shape_cast %225 : vector<1x32x32xbf16> to vector<32x32xbf16>
      %cst_195 = arith.constant dense<0.000000e+00> : vector<8x32xf32>
      %227 = tpu.matmul %arg24, %226, %cst_195 {dimension_numbers = #tpu.dot_dimension_numbers<[1], [0], [0], [1], [0, 0, 1, 1], [], []>} : vector<8x32xbf16>, vector<32x32xbf16>, vector<8x32xf32> -> vector<8x32xf32>
      %228 = arith.addf %224, %227 : vector<8x32xf32>
      %cst_196 = arith.constant 5.000000e-01 : f32
      %229 = vector.broadcast %cst_196 : f32 to vector<8x32xf32>
      %230 = arith.mulf %229, %228 : vector<8x32xf32>
      %231 = math.tanh %230 : vector<8x32xf32>
      %cst_197 = arith.constant 5.000000e-01 : f32
      %232 = vector.broadcast %cst_197 : f32 to vector<8x32xf32>
      %233 = arith.mulf %232, %231 : vector<8x32xf32>
      %cst_198 = arith.constant 5.000000e-01 : f32
      %234 = vector.broadcast %cst_198 : f32 to vector<8x32xf32>
      %235 = arith.addf %233, %234 : vector<8x32xf32>
      %236 = arith.mulf %235, %arg25 : vector<8x32xf32>
      %c2_199 = arith.constant 2 : index
      %237 = arith.index_cast %arg23 : i32 to index
      %c0_200 = arith.constant 0 : index
      %c0_201 = arith.constant 0 : index
      %238 = vector.load %arg15[%c2_199, %237, %c0_200, %c0_201] : memref<4x8x8x32xf32, #tpu.memory_space<vmem>>, vector<1x1x8x32xf32>
      %239 = vector.shape_cast %238 : vector<1x1x8x32xf32> to vector<8x32xf32>
      %c2_202 = arith.constant 2 : index
      %c0_203 = arith.constant 0 : index
      %c0_204 = arith.constant 0 : index
      %240 = vector.load %arg2[%c2_202, %c0_203, %c0_204] : memref<4x32x32xbf16, #tpu.memory_space<vmem>>, vector<1x32x32xbf16>
      %241 = vector.shape_cast %240 : vector<1x32x32xbf16> to vector<32x32xbf16>
      %cst_205 = arith.constant dense<0.000000e+00> : vector<8x32xf32>
      %242 = tpu.matmul %arg24, %241, %cst_205 {dimension_numbers = #tpu.dot_dimension_numbers<[1], [0], [0], [1], [0, 0, 1, 1], [], []>} : vector<8x32xbf16>, vector<32x32xbf16>, vector<8x32xf32> -> vector<8x32xf32>
      %243 = arith.addf %239, %242 : vector<8x32xf32>
      %244 = math.tanh %243 : vector<8x32xf32>
      %245 = arith.mulf %221, %244 : vector<8x32xf32>
      %246 = arith.addf %236, %245 : vector<8x32xf32>
      %c3_206 = arith.constant 3 : index
      %247 = arith.index_cast %arg23 : i32 to index
      %c0_207 = arith.constant 0 : index
      %c0_208 = arith.constant 0 : index
      %248 = vector.load %arg15[%c3_206, %247, %c0_207, %c0_208] : memref<4x8x8x32xf32, #tpu.memory_space<vmem>>, vector<1x1x8x32xf32>
      %249 = vector.shape_cast %248 : vector<1x1x8x32xf32> to vector<8x32xf32>
      %c3_209 = arith.constant 3 : index
      %c0_210 = arith.constant 0 : index
      %c0_211 = arith.constant 0 : index
      %250 = vector.load %arg2[%c3_209, %c0_210, %c0_211] : memref<4x32x32xbf16, #tpu.memory_space<vmem>>, vector<1x32x32xbf16>
      %251 = vector.shape_cast %250 : vector<1x32x32xbf16> to vector<32x32xbf16>
      %cst_212 = arith.constant dense<0.000000e+00> : vector<8x32xf32>
      %252 = tpu.matmul %arg24, %251, %cst_212 {dimension_numbers = #tpu.dot_dimension_numbers<[1], [0], [0], [1], [0, 0, 1, 1], [], []>} : vector<8x32xbf16>, vector<32x32xbf16>, vector<8x32xf32> -> vector<8x32xf32>
      %253 = arith.addf %249, %252 : vector<8x32xf32>
      %cst_213 = arith.constant 5.000000e-01 : f32
      %254 = vector.broadcast %cst_213 : f32 to vector<8x32xf32>
      %255 = arith.mulf %254, %253 : vector<8x32xf32>
      %256 = math.tanh %255 : vector<8x32xf32>
      %cst_214 = arith.constant 5.000000e-01 : f32
      %257 = vector.broadcast %cst_214 : f32 to vector<8x32xf32>
      %258 = arith.mulf %257, %256 : vector<8x32xf32>
      %cst_215 = arith.constant 5.000000e-01 : f32
      %259 = vector.broadcast %cst_215 : f32 to vector<8x32xf32>
      %260 = arith.addf %258, %259 : vector<8x32xf32>
      %261 = math.tanh %246 : vector<8x32xf32>
      %262 = arith.mulf %260, %261 : vector<8x32xf32>
      %263 = arith.truncf %262 : vector<8x32xf32> to vector<8x32xbf16>
      %264 = arith.index_cast %arg23 : i32 to index
      %c0_216 = arith.constant 0 : index
      %c0_217 = arith.constant 0 : index
      %265 = vector.load %arg16[%264, %c0_216, %c0_217] : memref<8x8x32xbf16, #tpu.memory_space<vmem>>, vector<1x8x32xbf16>
      %266 = vector.shape_cast %265 : vector<1x8x32xbf16> to vector<8x32xbf16>
      %267 = vector.shape_cast %263 : vector<8x32xbf16> to vector<1x8x32xbf16>
      tpu.vector_store %arg16[%264, %c0_216, %c0_217], %267 {strides = array<i32>} : memref<8x8x32xbf16, #tpu.memory_space<vmem>>, vector<1x8x32xbf16>,
      scf.yield %263, %246 : vector<8x32xbf16>, vector<8x32xf32>
    }
    %c8_i32_46 = arith.constant 8 : i32
    %c0_i32_47 = arith.constant 0 : i32
    %58 = tpu.memref_slice %arg22[%c0_i32_47] : memref<4x!tpu.dma_semaphore, #tpu.memory_space<semaphore_mem>> -> memref<1x!tpu.dma_semaphore, #tpu.memory_space<semaphore_mem>>
    %59 = tpu.memref_squeeze %58 : memref<1x!tpu.dma_semaphore, #tpu.memory_space<semaphore_mem>> -> memref<!tpu.dma_semaphore, #tpu.memory_space<semaphore_mem>>
    tpu.wait_dma2 semaphore(%59 : memref<!tpu.dma_semaphore, #tpu.memory_space<semaphore_mem>>) src(%arg4 : memref<4x32x32xbf16, #tpu.memory_space<any>>) dst(%arg18 : memref<4x32x32xbf16, #tpu.memory_space<vmem>>)
    %c0_48 = arith.constant 0 : index
    %c0_49 = arith.constant 0 : index
    %c0_50 = arith.constant 0 : index
    %60 = vector.load %arg16[%c0_48, %c0_49, %c0_50] : memref<8x8x32xbf16, #tpu.memory_space<vmem>>, vector<8x8x32xbf16>
    %61 = vector.shape_cast %60 : vector<8x8x32xbf16> to vector<64x32xbf16>
    %c0_51 = arith.constant 0 : index
    %c0_52 = arith.constant 0 : index
    %c0_53 = arith.constant 0 : index
    %62 = vector.load %arg18[%c0_51, %c0_52, %c0_53] : memref<4x32x32xbf16, #tpu.memory_space<vmem>>, vector<1x32x32xbf16>
    %63 = vector.shape_cast %62 : vector<1x32x32xbf16> to vector<32x32xbf16>
    %cst_54 = arith.constant dense<0.000000e+00> : vector<64x32xf32>
    %64 = tpu.matmul %61, %63, %cst_54 {dimension_numbers = #tpu.dot_dimension_numbers<[1], [0], [0], [1], [0, 0, 1, 1], [], []>} : vector<64x32xbf16>, vector<32x32xbf16>, vector<64x32xf32> -> vector<64x32xf32>
    %c0_55 = arith.constant 0 : index
    %c0_56 = arith.constant 0 : index
    %c0_57 = arith.constant 0 : index
    %65 = vector.load %arg6[%c0_55, %c0_56, %c0_57] : memref<4x1x32xf32, #tpu.memory_space<vmem>>, vector<1x1x32xf32>
    %66 = vector.shape_cast %65 : vector<1x1x32xf32> to vector<1x32xf32>
    %67 = vector.broadcast %66 : vector<1x32xf32> to vector<64x32xf32>
    %68 = arith.addf %64, %67 : vector<64x32xf32>
    %69 = vector.shape_cast %68 : vector<64x32xf32> to vector<8x8x32xf32>
    %c0_58 = arith.constant 0 : index
    %c0_59 = arith.constant 0 : index
    %c0_60 = arith.constant 0 : index
    %c0_61 = arith.constant 0 : index
    %70 = vector.load %arg15[%c0_58, %c0_59, %c0_60, %c0_61] : memref<4x8x8x32xf32, #tpu.memory_space<vmem>>, vector<1x8x8x32xf32>
    %71 = vector.shape_cast %70 : vector<1x8x8x32xf32> to vector<8x8x32xf32>
    %72 = vector.shape_cast %69 : vector<8x8x32xf32> to vector<1x8x8x32xf32>
    tpu.vector_store %arg15[%c0_58, %c0_59, %c0_60, %c0_61], %72 {strides = array<i32>} : memref<4x8x8x32xf32, #tpu.memory_space<vmem>>, vector<1x8x8x32xf32>,
    %c1_62 = arith.constant 1 : index
    %c0_63 = arith.constant 0 : index
    %c0_64 = arith.constant 0 : index
    %73 = vector.load %arg18[%c1_62, %c0_63, %c0_64] : memref<4x32x32xbf16, #tpu.memory_space<vmem>>, vector<1x32x32xbf16>
    %74 = vector.shape_cast %73 : vector<1x32x32xbf16> to vector<32x32xbf16>
    %cst_65 = arith.constant dense<0.000000e+00> : vector<64x32xf32>
    %75 = tpu.matmul %61, %74, %cst_65 {dimension_numbers = #tpu.dot_dimension_numbers<[1], [0], [0], [1], [0, 0, 1, 1], [], []>} : vector<64x32xbf16>, vector<32x32xbf16>, vector<64x32xf32> -> vector<64x32xf32>
    %c1_66 = arith.constant 1 : index
    %c0_67 = arith.constant 0 : index
    %c0_68 = arith.constant 0 : index
    %76 = vector.load %arg6[%c1_66, %c0_67, %c0_68] : memref<4x1x32xf32, #tpu.memory_space<vmem>>, vector<1x1x32xf32>
    %77 = vector.shape_cast %76 : vector<1x1x32xf32> to vector<1x32xf32>
    %78 = vector.broadcast %77 : vector<1x32xf32> to vector<64x32xf32>
    %79 = arith.addf %75, %78 : vector<64x32xf32>
    %80 = vector.shape_cast %79 : vector<64x32xf32> to vector<8x8x32xf32>
    %c1_69 = arith.constant 1 : index
    %c0_70 = arith.constant 0 : index
    %c0_71 = arith.constant 0 : index
    %c0_72 = arith.constant 0 : index
    %81 = vector.load %arg15[%c1_69, %c0_70, %c0_71, %c0_72] : memref<4x8x8x32xf32, #tpu.memory_space<vmem>>, vector<1x8x8x32xf32>
    %82 = vector.shape_cast %81 : vector<1x8x8x32xf32> to vector<8x8x32xf32>
    %83 = vector.shape_cast %80 : vector<8x8x32xf32> to vector<1x8x8x32xf32>
    tpu.vector_store %arg15[%c1_69, %c0_70, %c0_71, %c0_72], %83 {strides = array<i32>} : memref<4x8x8x32xf32, #tpu.memory_space<vmem>>, vector<1x8x8x32xf32>,
    %c2_73 = arith.constant 2 : index
    %c0_74 = arith.constant 0 : index
    %c0_75 = arith.constant 0 : index
    %84 = vector.load %arg18[%c2_73, %c0_74, %c0_75] : memref<4x32x32xbf16, #tpu.memory_space<vmem>>, vector<1x32x32xbf16>
    %85 = vector.shape_cast %84 : vector<1x32x32xbf16> to vector<32x32xbf16>
    %cst_76 = arith.constant dense<0.000000e+00> : vector<64x32xf32>
    %86 = tpu.matmul %61, %85, %cst_76 {dimension_numbers = #tpu.dot_dimension_numbers<[1], [0], [0], [1], [0, 0, 1, 1], [], []>} : vector<64x32xbf16>, vector<32x32xbf16>, vector<64x32xf32> -> vector<64x32xf32>
    %c2_77 = arith.constant 2 : index
    %c0_78 = arith.constant 0 : index
    %c0_79 = arith.constant 0 : index
    %87 = vector.load %arg6[%c2_77, %c0_78, %c0_79] : memref<4x1x32xf32, #tpu.memory_space<vmem>>, vector<1x1x32xf32>
    %88 = vector.shape_cast %87 : vector<1x1x32xf32> to vector<1x32xf32>
    %89 = vector.broadcast %88 : vector<1x32xf32> to vector<64x32xf32>
    %90 = arith.addf %86, %89 : vector<64x32xf32>
    %91 = vector.shape_cast %90 : vector<64x32xf32> to vector<8x8x32xf32>
    %c2_80 = arith.constant 2 : index
    %c0_81 = arith.constant 0 : index
    %c0_82 = arith.constant 0 : index
    %c0_83 = arith.constant 0 : index
    %92 = vector.load %arg15[%c2_80, %c0_81, %c0_82, %c0_83] : memref<4x8x8x32xf32, #tpu.memory_space<vmem>>, vector<1x8x8x32xf32>
    %93 = vector.shape_cast %92 : vector<1x8x8x32xf32> to vector<8x8x32xf32>
    %94 = vector.shape_cast %91 : vector<8x8x32xf32> to vector<1x8x8x32xf32>
    tpu.vector_store %arg15[%c2_80, %c0_81, %c0_82, %c0_83], %94 {strides = array<i32>} : memref<4x8x8x32xf32, #tpu.memory_space<vmem>>, vector<1x8x8x32xf32>,
    %c3_84 = arith.constant 3 : index
    %c0_85 = arith.constant 0 : index
    %c0_86 = arith.constant 0 : index
    %95 = vector.load %arg18[%c3_84, %c0_85, %c0_86] : memref<4x32x32xbf16, #tpu.memory_space<vmem>>, vector<1x32x32xbf16>
    %96 = vector.shape_cast %95 : vector<1x32x32xbf16> to vector<32x32xbf16>
    %cst_87 = arith.constant dense<0.000000e+00> : vector<64x32xf32>
    %97 = tpu.matmul %61, %96, %cst_87 {dimension_numbers = #tpu.dot_dimension_numbers<[1], [0], [0], [1], [0, 0, 1, 1], [], []>} : vector<64x32xbf16>, vector<32x32xbf16>, vector<64x32xf32> -> vector<64x32xf32>
    %c3_88 = arith.constant 3 : index
    %c0_89 = arith.constant 0 : index
    %c0_90 = arith.constant 0 : index
    %98 = vector.load %arg6[%c3_88, %c0_89, %c0_90] : memref<4x1x32xf32, #tpu.memory_space<vmem>>, vector<1x1x32xf32>
    %99 = vector.shape_cast %98 : vector<1x1x32xf32> to vector<1x32xf32>
    %100 = vector.broadcast %99 : vector<1x32xf32> to vector<64x32xf32>
    %101 = arith.addf %97, %100 : vector<64x32xf32>
    %102 = vector.shape_cast %101 : vector<64x32xf32> to vector<8x8x32xf32>
    %c3_91 = arith.constant 3 : index
    %c0_92 = arith.constant 0 : index
    %c0_93 = arith.constant 0 : index
    %c0_94 = arith.constant 0 : index
    %103 = vector.load %arg15[%c3_91, %c0_92, %c0_93, %c0_94] : memref<4x8x8x32xf32, #tpu.memory_space<vmem>>, vector<1x8x8x32xf32>
    %104 = vector.shape_cast %103 : vector<1x8x8x32xf32> to vector<8x8x32xf32>
    %105 = vector.shape_cast %102 : vector<8x8x32xf32> to vector<1x8x8x32xf32>
    tpu.vector_store %arg15[%c3_91, %c0_92, %c0_93, %c0_94], %105 {strides = array<i32>} : memref<4x8x8x32xf32, #tpu.memory_space<vmem>>, vector<1x8x8x32xf32>,
    %c1_i32_95 = arith.constant 1 : i32
    %106 = tpu.memref_slice %arg22[%c1_i32_95] : memref<4x!tpu.dma_semaphore, #tpu.memory_space<semaphore_mem>> -> memref<1x!tpu.dma_semaphore, #tpu.memory_space<semaphore_mem>>
    %107 = tpu.memref_squeeze %106 : memref<1x!tpu.dma_semaphore, #tpu.memory_space<semaphore_mem>> -> memref<!tpu.dma_semaphore, #tpu.memory_space<semaphore_mem>>
    tpu.wait_dma2 semaphore(%107 : memref<!tpu.dma_semaphore, #tpu.memory_space<semaphore_mem>>) src(%arg5 : memref<4x32x32xbf16, #tpu.memory_space<any>>) dst(%arg19 : memref<4x32x32xbf16, #tpu.memory_space<vmem>>)
    %cst_96 = arith.constant 0.000000e+00 : bf16
    %108 = vector.broadcast %cst_96 : bf16 to vector<8x32xbf16>
    %cst_97 = arith.constant 0.000000e+00 : f32
    %109 = vector.broadcast %cst_97 : f32 to vector<8x32xf32>
    %c0_i32_98 = arith.constant 0 : i32
    %c8_i32_99 = arith.constant 8 : i32
    %110 = arith.addi %c0_i32_98, %c8_i32_99 : i32
    %c1_i32_100 = arith.constant 1 : i32
    %111:2 = scf.for %arg23 = %c0_i32_98 to %110 step %c1_i32_100 iter_args(%arg24 = %108, %arg25 = %109) -> (vector<8x32xbf16>, vector<8x32xf32>)  : i32 {
      %c0_179 = arith.constant 0 : index
      %208 = arith.index_cast %arg23 : i32 to index
      %c0_180 = arith.constant 0 : index
      %c0_181 = arith.constant 0 : index
      %209 = vector.load %arg15[%c0_179, %208, %c0_180, %c0_181] : memref<4x8x8x32xf32, #tpu.memory_space<vmem>>, vector<1x1x8x32xf32>
      %210 = vector.shape_cast %209 : vector<1x1x8x32xf32> to vector<8x32xf32>
      %c0_182 = arith.constant 0 : index
      %c0_183 = arith.constant 0 : index
      %c0_184 = arith.constant 0 : index
      %211 = vector.load %arg19[%c0_182, %c0_183, %c0_184] : memref<4x32x32xbf16, #tpu.memory_space<vmem>>, vector<1x32x32xbf16>
      %212 = vector.shape_cast %211 : vector<1x32x32xbf16> to vector<32x32xbf16>
      %cst_185 = arith.constant dense<0.000000e+00> : vector<8x32xf32>
      %213 = tpu.matmul %arg24, %212, %cst_185 {dimension_numbers = #tpu.dot_dimension_numbers<[1], [0], [0], [1], [0, 0, 1, 1], [], []>} : vector<8x32xbf16>, vector<32x32xbf16>, vector<8x32xf32> -> vector<8x32xf32>
      %214 = arith.addf %210, %213 : vector<8x32xf32>
      %cst_186 = arith.constant 5.000000e-01 : f32
      %215 = vector.broadcast %cst_186 : f32 to vector<8x32xf32>
      %216 = arith.mulf %215, %214 : vector<8x32xf32>
      %217 = math.tanh %216 : vector<8x32xf32>
      %cst_187 = arith.constant 5.000000e-01 : f32
      %218 = vector.broadcast %cst_187 : f32 to vector<8x32xf32>
      %219 = arith.mulf %218, %217 : vector<8x32xf32>
      %cst_188 = arith.constant 5.000000e-01 : f32
      %220 = vector.broadcast %cst_188 : f32 to vector<8x32xf32>
      %221 = arith.addf %219, %220 : vector<8x32xf32>
      %c1_189 = arith.constant 1 : index
      %222 = arith.index_cast %arg23 : i32 to index
      %c0_190 = arith.constant 0 : index
      %c0_191 = arith.constant 0 : index
      %223 = vector.load %arg15[%c1_189, %222, %c0_190, %c0_191] : memref<4x8x8x32xf32, #tpu.memory_space<vmem>>, vector<1x1x8x32xf32>
      %224 = vector.shape_cast %223 : vector<1x1x8x32xf32> to vector<8x32xf32>
      %c1_192 = arith.constant 1 : index
      %c0_193 = arith.constant 0 : index
      %c0_194 = arith.constant 0 : index
      %225 = vector.load %arg19[%c1_192, %c0_193, %c0_194] : memref<4x32x32xbf16, #tpu.memory_space<vmem>>, vector<1x32x32xbf16>
      %226 = vector.shape_cast %225 : vector<1x32x32xbf16> to vector<32x32xbf16>
      %cst_195 = arith.constant dense<0.000000e+00> : vector<8x32xf32>
      %227 = tpu.matmul %arg24, %226, %cst_195 {dimension_numbers = #tpu.dot_dimension_numbers<[1], [0], [0], [1], [0, 0, 1, 1], [], []>} : vector<8x32xbf16>, vector<32x32xbf16>, vector<8x32xf32> -> vector<8x32xf32>
      %228 = arith.addf %224, %227 : vector<8x32xf32>
      %cst_196 = arith.constant 5.000000e-01 : f32
      %229 = vector.broadcast %cst_196 : f32 to vector<8x32xf32>
      %230 = arith.mulf %229, %228 : vector<8x32xf32>
      %231 = math.tanh %230 : vector<8x32xf32>
      %cst_197 = arith.constant 5.000000e-01 : f32
      %232 = vector.broadcast %cst_197 : f32 to vector<8x32xf32>
      %233 = arith.mulf %232, %231 : vector<8x32xf32>
      %cst_198 = arith.constant 5.000000e-01 : f32
      %234 = vector.broadcast %cst_198 : f32 to vector<8x32xf32>
      %235 = arith.addf %233, %234 : vector<8x32xf32>
      %236 = arith.mulf %235, %arg25 : vector<8x32xf32>
      %c2_199 = arith.constant 2 : index
      %237 = arith.index_cast %arg23 : i32 to index
      %c0_200 = arith.constant 0 : index
      %c0_201 = arith.constant 0 : index
      %238 = vector.load %arg15[%c2_199, %237, %c0_200, %c0_201] : memref<4x8x8x32xf32, #tpu.memory_space<vmem>>, vector<1x1x8x32xf32>
      %239 = vector.shape_cast %238 : vector<1x1x8x32xf32> to vector<8x32xf32>
      %c2_202 = arith.constant 2 : index
      %c0_203 = arith.constant 0 : index
      %c0_204 = arith.constant 0 : index
      %240 = vector.load %arg19[%c2_202, %c0_203, %c0_204] : memref<4x32x32xbf16, #tpu.memory_space<vmem>>, vector<1x32x32xbf16>
      %241 = vector.shape_cast %240 : vector<1x32x32xbf16> to vector<32x32xbf16>
      %cst_205 = arith.constant dense<0.000000e+00> : vector<8x32xf32>
      %242 = tpu.matmul %arg24, %241, %cst_205 {dimension_numbers = #tpu.dot_dimension_numbers<[1], [0], [0], [1], [0, 0, 1, 1], [], []>} : vector<8x32xbf16>, vector<32x32xbf16>, vector<8x32xf32> -> vector<8x32xf32>
      %243 = arith.addf %239, %242 : vector<8x32xf32>
      %244 = math.tanh %243 : vector<8x32xf32>
      %245 = arith.mulf %221, %244 : vector<8x32xf32>
      %246 = arith.addf %236, %245 : vector<8x32xf32>
      %c3_206 = arith.constant 3 : index
      %247 = arith.index_cast %arg23 : i32 to index
      %c0_207 = arith.constant 0 : index
      %c0_208 = arith.constant 0 : index
      %248 = vector.load %arg15[%c3_206, %247, %c0_207, %c0_208] : memref<4x8x8x32xf32, #tpu.memory_space<vmem>>, vector<1x1x8x32xf32>
      %249 = vector.shape_cast %248 : vector<1x1x8x32xf32> to vector<8x32xf32>
      %c3_209 = arith.constant 3 : index
      %c0_210 = arith.constant 0 : index
      %c0_211 = arith.constant 0 : index
      %250 = vector.load %arg19[%c3_209, %c0_210, %c0_211] : memref<4x32x32xbf16, #tpu.memory_space<vmem>>, vector<1x32x32xbf16>
      %251 = vector.shape_cast %250 : vector<1x32x32xbf16> to vector<32x32xbf16>
      %cst_212 = arith.constant dense<0.000000e+00> : vector<8x32xf32>
      %252 = tpu.matmul %arg24, %251, %cst_212 {dimension_numbers = #tpu.dot_dimension_numbers<[1], [0], [0], [1], [0, 0, 1, 1], [], []>} : vector<8x32xbf16>, vector<32x32xbf16>, vector<8x32xf32> -> vector<8x32xf32>
      %253 = arith.addf %249, %252 : vector<8x32xf32>
      %cst_213 = arith.constant 5.000000e-01 : f32
      %254 = vector.broadcast %cst_213 : f32 to vector<8x32xf32>
      %255 = arith.mulf %254, %253 : vector<8x32xf32>
      %256 = math.tanh %255 : vector<8x32xf32>
      %cst_214 = arith.constant 5.000000e-01 : f32
      %257 = vector.broadcast %cst_214 : f32 to vector<8x32xf32>
      %258 = arith.mulf %257, %256 : vector<8x32xf32>
      %cst_215 = arith.constant 5.000000e-01 : f32
      %259 = vector.broadcast %cst_215 : f32 to vector<8x32xf32>
      %260 = arith.addf %258, %259 : vector<8x32xf32>
      %261 = math.tanh %246 : vector<8x32xf32>
      %262 = arith.mulf %260, %261 : vector<8x32xf32>
      %263 = arith.truncf %262 : vector<8x32xf32> to vector<8x32xbf16>
      %264 = arith.index_cast %arg23 : i32 to index
      %c0_216 = arith.constant 0 : index
      %c0_217 = arith.constant 0 : index
      %265 = vector.load %arg17[%264, %c0_216, %c0_217] : memref<8x8x32xbf16, #tpu.memory_space<vmem>>, vector<1x8x32xbf16>
      %266 = vector.shape_cast %265 : vector<1x8x32xbf16> to vector<8x32xbf16>
      %267 = vector.shape_cast %263 : vector<8x32xbf16> to vector<1x8x32xbf16>
      tpu.vector_store %arg17[%264, %c0_216, %c0_217], %267 {strides = array<i32>} : memref<8x8x32xbf16, #tpu.memory_space<vmem>>, vector<1x8x32xbf16>,
      scf.yield %263, %246 : vector<8x32xbf16>, vector<8x32xf32>
    }
    %c8_i32_101 = arith.constant 8 : i32
    %c2_i32_102 = arith.constant 2 : i32
    %112 = tpu.memref_slice %arg22[%c2_i32_102] : memref<4x!tpu.dma_semaphore, #tpu.memory_space<semaphore_mem>> -> memref<1x!tpu.dma_semaphore, #tpu.memory_space<semaphore_mem>>
    %113 = tpu.memref_squeeze %112 : memref<1x!tpu.dma_semaphore, #tpu.memory_space<semaphore_mem>> -> memref<!tpu.dma_semaphore, #tpu.memory_space<semaphore_mem>>
    tpu.wait_dma2 semaphore(%113 : memref<!tpu.dma_semaphore, #tpu.memory_space<semaphore_mem>>) src(%arg7 : memref<4x32x32xbf16, #tpu.memory_space<any>>) dst(%arg20 : memref<4x32x32xbf16, #tpu.memory_space<vmem>>)
    %c0_103 = arith.constant 0 : index
    %c0_104 = arith.constant 0 : index
    %c0_105 = arith.constant 0 : index
    %114 = vector.load %arg17[%c0_103, %c0_104, %c0_105] : memref<8x8x32xbf16, #tpu.memory_space<vmem>>, vector<8x8x32xbf16>
    %115 = vector.shape_cast %114 : vector<8x8x32xbf16> to vector<64x32xbf16>
    %c0_106 = arith.constant 0 : index
    %c0_107 = arith.constant 0 : index
    %c0_108 = arith.constant 0 : index
    %116 = vector.load %arg20[%c0_106, %c0_107, %c0_108] : memref<4x32x32xbf16, #tpu.memory_space<vmem>>, vector<1x32x32xbf16>
    %117 = vector.shape_cast %116 : vector<1x32x32xbf16> to vector<32x32xbf16>
    %cst_109 = arith.constant dense<0.000000e+00> : vector<64x32xf32>
    %118 = tpu.matmul %115, %117, %cst_109 {dimension_numbers = #tpu.dot_dimension_numbers<[1], [0], [0], [1], [0, 0, 1, 1], [], []>} : vector<64x32xbf16>, vector<32x32xbf16>, vector<64x32xf32> -> vector<64x32xf32>
    %c0_110 = arith.constant 0 : index
    %c0_111 = arith.constant 0 : index
    %c0_112 = arith.constant 0 : index
    %119 = vector.load %arg9[%c0_110, %c0_111, %c0_112] : memref<4x1x32xf32, #tpu.memory_space<vmem>>, vector<1x1x32xf32>
    %120 = vector.shape_cast %119 : vector<1x1x32xf32> to vector<1x32xf32>
    %121 = vector.broadcast %120 : vector<1x32xf32> to vector<64x32xf32>
    %122 = arith.addf %118, %121 : vector<64x32xf32>
    %123 = vector.shape_cast %122 : vector<64x32xf32> to vector<8x8x32xf32>
    %c0_113 = arith.constant 0 : index
    %c0_114 = arith.constant 0 : index
    %c0_115 = arith.constant 0 : index
    %c0_116 = arith.constant 0 : index
    %124 = vector.load %arg15[%c0_113, %c0_114, %c0_115, %c0_116] : memref<4x8x8x32xf32, #tpu.memory_space<vmem>>, vector<1x8x8x32xf32>
    %125 = vector.shape_cast %124 : vector<1x8x8x32xf32> to vector<8x8x32xf32>
    %126 = vector.shape_cast %123 : vector<8x8x32xf32> to vector<1x8x8x32xf32>
    tpu.vector_store %arg15[%c0_113, %c0_114, %c0_115, %c0_116], %126 {strides = array<i32>} : memref<4x8x8x32xf32, #tpu.memory_space<vmem>>, vector<1x8x8x32xf32>,
    %c1_117 = arith.constant 1 : index
    %c0_118 = arith.constant 0 : index
    %c0_119 = arith.constant 0 : index
    %127 = vector.load %arg20[%c1_117, %c0_118, %c0_119] : memref<4x32x32xbf16, #tpu.memory_space<vmem>>, vector<1x32x32xbf16>
    %128 = vector.shape_cast %127 : vector<1x32x32xbf16> to vector<32x32xbf16>
    %cst_120 = arith.constant dense<0.000000e+00> : vector<64x32xf32>
    %129 = tpu.matmul %115, %128, %cst_120 {dimension_numbers = #tpu.dot_dimension_numbers<[1], [0], [0], [1], [0, 0, 1, 1], [], []>} : vector<64x32xbf16>, vector<32x32xbf16>, vector<64x32xf32> -> vector<64x32xf32>
    %c1_121 = arith.constant 1 : index
    %c0_122 = arith.constant 0 : index
    %c0_123 = arith.constant 0 : index
    %130 = vector.load %arg9[%c1_121, %c0_122, %c0_123] : memref<4x1x32xf32, #tpu.memory_space<vmem>>, vector<1x1x32xf32>
    %131 = vector.shape_cast %130 : vector<1x1x32xf32> to vector<1x32xf32>
    %132 = vector.broadcast %131 : vector<1x32xf32> to vector<64x32xf32>
    %133 = arith.addf %129, %132 : vector<64x32xf32>
    %134 = vector.shape_cast %133 : vector<64x32xf32> to vector<8x8x32xf32>
    %c1_124 = arith.constant 1 : index
    %c0_125 = arith.constant 0 : index
    %c0_126 = arith.constant 0 : index
    %c0_127 = arith.constant 0 : index
    %135 = vector.load %arg15[%c1_124, %c0_125, %c0_126, %c0_127] : memref<4x8x8x32xf32, #tpu.memory_space<vmem>>, vector<1x8x8x32xf32>
    %136 = vector.shape_cast %135 : vector<1x8x8x32xf32> to vector<8x8x32xf32>
    %137 = vector.shape_cast %134 : vector<8x8x32xf32> to vector<1x8x8x32xf32>
    tpu.vector_store %arg15[%c1_124, %c0_125, %c0_126, %c0_127], %137 {strides = array<i32>} : memref<4x8x8x32xf32, #tpu.memory_space<vmem>>, vector<1x8x8x32xf32>,
    %c2_128 = arith.constant 2 : index
    %c0_129 = arith.constant 0 : index
    %c0_130 = arith.constant 0 : index
    %138 = vector.load %arg20[%c2_128, %c0_129, %c0_130] : memref<4x32x32xbf16, #tpu.memory_space<vmem>>, vector<1x32x32xbf16>
    %139 = vector.shape_cast %138 : vector<1x32x32xbf16> to vector<32x32xbf16>
    %cst_131 = arith.constant dense<0.000000e+00> : vector<64x32xf32>
    %140 = tpu.matmul %115, %139, %cst_131 {dimension_numbers = #tpu.dot_dimension_numbers<[1], [0], [0], [1], [0, 0, 1, 1], [], []>} : vector<64x32xbf16>, vector<32x32xbf16>, vector<64x32xf32> -> vector<64x32xf32>
    %c2_132 = arith.constant 2 : index
    %c0_133 = arith.constant 0 : index
    %c0_134 = arith.constant 0 : index
    %141 = vector.load %arg9[%c2_132, %c0_133, %c0_134] : memref<4x1x32xf32, #tpu.memory_space<vmem>>, vector<1x1x32xf32>
    %142 = vector.shape_cast %141 : vector<1x1x32xf32> to vector<1x32xf32>
    %143 = vector.broadcast %142 : vector<1x32xf32> to vector<64x32xf32>
    %144 = arith.addf %140, %143 : vector<64x32xf32>
    %145 = vector.shape_cast %144 : vector<64x32xf32> to vector<8x8x32xf32>
    %c2_135 = arith.constant 2 : index
    %c0_136 = arith.constant 0 : index
    %c0_137 = arith.constant 0 : index
    %c0_138 = arith.constant 0 : index
    %146 = vector.load %arg15[%c2_135, %c0_136, %c0_137, %c0_138] : memref<4x8x8x32xf32, #tpu.memory_space<vmem>>, vector<1x8x8x32xf32>
    %147 = vector.shape_cast %146 : vector<1x8x8x32xf32> to vector<8x8x32xf32>
    %148 = vector.shape_cast %145 : vector<8x8x32xf32> to vector<1x8x8x32xf32>
    tpu.vector_store %arg15[%c2_135, %c0_136, %c0_137, %c0_138], %148 {strides = array<i32>} : memref<4x8x8x32xf32, #tpu.memory_space<vmem>>, vector<1x8x8x32xf32>,
    %c3_139 = arith.constant 3 : index
    %c0_140 = arith.constant 0 : index
    %c0_141 = arith.constant 0 : index
    %149 = vector.load %arg20[%c3_139, %c0_140, %c0_141] : memref<4x32x32xbf16, #tpu.memory_space<vmem>>, vector<1x32x32xbf16>
    %150 = vector.shape_cast %149 : vector<1x32x32xbf16> to vector<32x32xbf16>
    %cst_142 = arith.constant dense<0.000000e+00> : vector<64x32xf32>
    %151 = tpu.matmul %115, %150, %cst_142 {dimension_numbers = #tpu.dot_dimension_numbers<[1], [0], [0], [1], [0, 0, 1, 1], [], []>} : vector<64x32xbf16>, vector<32x32xbf16>, vector<64x32xf32> -> vector<64x32xf32>
    %c3_143 = arith.constant 3 : index
    %c0_144 = arith.constant 0 : index
    %c0_145 = arith.constant 0 : index
    %152 = vector.load %arg9[%c3_143, %c0_144, %c0_145] : memref<4x1x32xf32, #tpu.memory_space<vmem>>, vector<1x1x32xf32>
    %153 = vector.shape_cast %152 : vector<1x1x32xf32> to vector<1x32xf32>
    %154 = vector.broadcast %153 : vector<1x32xf32> to vector<64x32xf32>
    %155 = arith.addf %151, %154 : vector<64x32xf32>
    %156 = vector.shape_cast %155 : vector<64x32xf32> to vector<8x8x32xf32>
    %c3_146 = arith.constant 3 : index
    %c0_147 = arith.constant 0 : index
    %c0_148 = arith.constant 0 : index
    %c0_149 = arith.constant 0 : index
    %157 = vector.load %arg15[%c3_146, %c0_147, %c0_148, %c0_149] : memref<4x8x8x32xf32, #tpu.memory_space<vmem>>, vector<1x8x8x32xf32>
    %158 = vector.shape_cast %157 : vector<1x8x8x32xf32> to vector<8x8x32xf32>
    %159 = vector.shape_cast %156 : vector<8x8x32xf32> to vector<1x8x8x32xf32>
    tpu.vector_store %arg15[%c3_146, %c0_147, %c0_148, %c0_149], %159 {strides = array<i32>} : memref<4x8x8x32xf32, #tpu.memory_space<vmem>>, vector<1x8x8x32xf32>,
    %c3_i32_150 = arith.constant 3 : i32
    %160 = tpu.memref_slice %arg22[%c3_i32_150] : memref<4x!tpu.dma_semaphore, #tpu.memory_space<semaphore_mem>> -> memref<1x!tpu.dma_semaphore, #tpu.memory_space<semaphore_mem>>
    %161 = tpu.memref_squeeze %160 : memref<1x!tpu.dma_semaphore, #tpu.memory_space<semaphore_mem>> -> memref<!tpu.dma_semaphore, #tpu.memory_space<semaphore_mem>>
    tpu.wait_dma2 semaphore(%161 : memref<!tpu.dma_semaphore, #tpu.memory_space<semaphore_mem>>) src(%arg8 : memref<4x32x32xbf16, #tpu.memory_space<any>>) dst(%arg21 : memref<4x32x32xbf16, #tpu.memory_space<vmem>>)
    %cst_151 = arith.constant 0.000000e+00 : bf16
    %162 = vector.broadcast %cst_151 : bf16 to vector<8x32xbf16>
    %cst_152 = arith.constant 0.000000e+00 : f32
    %163 = vector.broadcast %cst_152 : f32 to vector<8x32xf32>
    %c0_i32_153 = arith.constant 0 : i32
    %c8_i32_154 = arith.constant 8 : i32
    %164 = arith.addi %c0_i32_153, %c8_i32_154 : i32
    %c1_i32_155 = arith.constant 1 : i32
    %165:2 = scf.for %arg23 = %c0_i32_153 to %164 step %c1_i32_155 iter_args(%arg24 = %162, %arg25 = %163) -> (vector<8x32xbf16>, vector<8x32xf32>)  : i32 {
      %c0_179 = arith.constant 0 : index
      %208 = arith.index_cast %arg23 : i32 to index
      %c0_180 = arith.constant 0 : index
      %c0_181 = arith.constant 0 : index
      %209 = vector.load %arg15[%c0_179, %208, %c0_180, %c0_181] : memref<4x8x8x32xf32, #tpu.memory_space<vmem>>, vector<1x1x8x32xf32>
      %210 = vector.shape_cast %209 : vector<1x1x8x32xf32> to vector<8x32xf32>
      %c0_182 = arith.constant 0 : index
      %c0_183 = arith.constant 0 : index
      %c0_184 = arith.constant 0 : index
      %211 = vector.load %arg21[%c0_182, %c0_183, %c0_184] : memref<4x32x32xbf16, #tpu.memory_space<vmem>>, vector<1x32x32xbf16>
      %212 = vector.shape_cast %211 : vector<1x32x32xbf16> to vector<32x32xbf16>
      %cst_185 = arith.constant dense<0.000000e+00> : vector<8x32xf32>
      %213 = tpu.matmul %arg24, %212, %cst_185 {dimension_numbers = #tpu.dot_dimension_numbers<[1], [0], [0], [1], [0, 0, 1, 1], [], []>} : vector<8x32xbf16>, vector<32x32xbf16>, vector<8x32xf32> -> vector<8x32xf32>
      %214 = arith.addf %210, %213 : vector<8x32xf32>
      %cst_186 = arith.constant 5.000000e-01 : f32
      %215 = vector.broadcast %cst_186 : f32 to vector<8x32xf32>
      %216 = arith.mulf %215, %214 : vector<8x32xf32>
      %217 = math.tanh %216 : vector<8x32xf32>
      %cst_187 = arith.constant 5.000000e-01 : f32
      %218 = vector.broadcast %cst_187 : f32 to vector<8x32xf32>
      %219 = arith.mulf %218, %217 : vector<8x32xf32>
      %cst_188 = arith.constant 5.000000e-01 : f32
      %220 = vector.broadcast %cst_188 : f32 to vector<8x32xf32>
      %221 = arith.addf %219, %220 : vector<8x32xf32>
      %c1_189 = arith.constant 1 : index
      %222 = arith.index_cast %arg23 : i32 to index
      %c0_190 = arith.constant 0 : index
      %c0_191 = arith.constant 0 : index
      %223 = vector.load %arg15[%c1_189, %222, %c0_190, %c0_191] : memref<4x8x8x32xf32, #tpu.memory_space<vmem>>, vector<1x1x8x32xf32>
      %224 = vector.shape_cast %223 : vector<1x1x8x32xf32> to vector<8x32xf32>
      %c1_192 = arith.constant 1 : index
      %c0_193 = arith.constant 0 : index
      %c0_194 = arith.constant 0 : index
      %225 = vector.load %arg21[%c1_192, %c0_193, %c0_194] : memref<4x32x32xbf16, #tpu.memory_space<vmem>>, vector<1x32x32xbf16>
      %226 = vector.shape_cast %225 : vector<1x32x32xbf16> to vector<32x32xbf16>
      %cst_195 = arith.constant dense<0.000000e+00> : vector<8x32xf32>
      %227 = tpu.matmul %arg24, %226, %cst_195 {dimension_numbers = #tpu.dot_dimension_numbers<[1], [0], [0], [1], [0, 0, 1, 1], [], []>} : vector<8x32xbf16>, vector<32x32xbf16>, vector<8x32xf32> -> vector<8x32xf32>
      %228 = arith.addf %224, %227 : vector<8x32xf32>
      %cst_196 = arith.constant 5.000000e-01 : f32
      %229 = vector.broadcast %cst_196 : f32 to vector<8x32xf32>
      %230 = arith.mulf %229, %228 : vector<8x32xf32>
      %231 = math.tanh %230 : vector<8x32xf32>
      %cst_197 = arith.constant 5.000000e-01 : f32
      %232 = vector.broadcast %cst_197 : f32 to vector<8x32xf32>
      %233 = arith.mulf %232, %231 : vector<8x32xf32>
      %cst_198 = arith.constant 5.000000e-01 : f32
      %234 = vector.broadcast %cst_198 : f32 to vector<8x32xf32>
      %235 = arith.addf %233, %234 : vector<8x32xf32>
      %236 = arith.mulf %235, %arg25 : vector<8x32xf32>
      %c2_199 = arith.constant 2 : index
      %237 = arith.index_cast %arg23 : i32 to index
      %c0_200 = arith.constant 0 : index
      %c0_201 = arith.constant 0 : index
      %238 = vector.load %arg15[%c2_199, %237, %c0_200, %c0_201] : memref<4x8x8x32xf32, #tpu.memory_space<vmem>>, vector<1x1x8x32xf32>
      %239 = vector.shape_cast %238 : vector<1x1x8x32xf32> to vector<8x32xf32>
      %c2_202 = arith.constant 2 : index
      %c0_203 = arith.constant 0 : index
      %c0_204 = arith.constant 0 : index
      %240 = vector.load %arg21[%c2_202, %c0_203, %c0_204] : memref<4x32x32xbf16, #tpu.memory_space<vmem>>, vector<1x32x32xbf16>
      %241 = vector.shape_cast %240 : vector<1x32x32xbf16> to vector<32x32xbf16>
      %cst_205 = arith.constant dense<0.000000e+00> : vector<8x32xf32>
      %242 = tpu.matmul %arg24, %241, %cst_205 {dimension_numbers = #tpu.dot_dimension_numbers<[1], [0], [0], [1], [0, 0, 1, 1], [], []>} : vector<8x32xbf16>, vector<32x32xbf16>, vector<8x32xf32> -> vector<8x32xf32>
      %243 = arith.addf %239, %242 : vector<8x32xf32>
      %244 = math.tanh %243 : vector<8x32xf32>
      %245 = arith.mulf %221, %244 : vector<8x32xf32>
      %246 = arith.addf %236, %245 : vector<8x32xf32>
      %c3_206 = arith.constant 3 : index
      %247 = arith.index_cast %arg23 : i32 to index
      %c0_207 = arith.constant 0 : index
      %c0_208 = arith.constant 0 : index
      %248 = vector.load %arg15[%c3_206, %247, %c0_207, %c0_208] : memref<4x8x8x32xf32, #tpu.memory_space<vmem>>, vector<1x1x8x32xf32>
      %249 = vector.shape_cast %248 : vector<1x1x8x32xf32> to vector<8x32xf32>
      %c3_209 = arith.constant 3 : index
      %c0_210 = arith.constant 0 : index
      %c0_211 = arith.constant 0 : index
      %250 = vector.load %arg21[%c3_209, %c0_210, %c0_211] : memref<4x32x32xbf16, #tpu.memory_space<vmem>>, vector<1x32x32xbf16>
      %251 = vector.shape_cast %250 : vector<1x32x32xbf16> to vector<32x32xbf16>
      %cst_212 = arith.constant dense<0.000000e+00> : vector<8x32xf32>
      %252 = tpu.matmul %arg24, %251, %cst_212 {dimension_numbers = #tpu.dot_dimension_numbers<[1], [0], [0], [1], [0, 0, 1, 1], [], []>} : vector<8x32xbf16>, vector<32x32xbf16>, vector<8x32xf32> -> vector<8x32xf32>
      %253 = arith.addf %249, %252 : vector<8x32xf32>
      %cst_213 = arith.constant 5.000000e-01 : f32
      %254 = vector.broadcast %cst_213 : f32 to vector<8x32xf32>
      %255 = arith.mulf %254, %253 : vector<8x32xf32>
      %256 = math.tanh %255 : vector<8x32xf32>
      %cst_214 = arith.constant 5.000000e-01 : f32
      %257 = vector.broadcast %cst_214 : f32 to vector<8x32xf32>
      %258 = arith.mulf %257, %256 : vector<8x32xf32>
      %cst_215 = arith.constant 5.000000e-01 : f32
      %259 = vector.broadcast %cst_215 : f32 to vector<8x32xf32>
      %260 = arith.addf %258, %259 : vector<8x32xf32>
      %261 = math.tanh %246 : vector<8x32xf32>
      %262 = arith.mulf %260, %261 : vector<8x32xf32>
      %263 = arith.truncf %262 : vector<8x32xf32> to vector<8x32xbf16>
      %264 = arith.index_cast %arg23 : i32 to index
      %c0_216 = arith.constant 0 : index
      %c0_217 = arith.constant 0 : index
      %265 = vector.load %arg16[%264, %c0_216, %c0_217] : memref<8x8x32xbf16, #tpu.memory_space<vmem>>, vector<1x8x32xbf16>
      %266 = vector.shape_cast %265 : vector<1x8x32xbf16> to vector<8x32xbf16>
      %267 = vector.shape_cast %263 : vector<8x32xbf16> to vector<1x8x32xbf16>
      tpu.vector_store %arg16[%264, %c0_216, %c0_217], %267 {strides = array<i32>} : memref<8x8x32xbf16, #tpu.memory_space<vmem>>, vector<1x8x32xbf16>,
      scf.yield %263, %246 : vector<8x32xbf16>, vector<8x32xf32>
    }
    %c8_i32_156 = arith.constant 8 : i32
    %c0_157 = arith.constant 0 : index
    %c0_158 = arith.constant 0 : index
    %c0_159 = arith.constant 0 : index
    %166 = vector.load %arg16[%c0_157, %c0_158, %c0_159] : memref<8x8x32xbf16, #tpu.memory_space<vmem>>, vector<8x8x32xbf16>
    %167 = arith.extf %166 : vector<8x8x32xbf16> to vector<8x8x32xf32>
    %168 = vector.extract_strided_slice %167 {offsets = [7, 0, 0], sizes = [1, 8, 32], strides = [1, 1, 1]} : vector<8x8x32xf32> to vector<1x8x32xf32>
    %169 = vector.shape_cast %168 : vector<1x8x32xf32> to vector<8x32xf32>
    %170 = vector.shape_cast %169 : vector<8x32xf32> to vector<1x8x32xf32>
    %171 = vector.broadcast %170 : vector<1x8x32xf32> to vector<8x8x32xf32>
    %172 = arith.mulf %167, %171 : vector<8x8x32xf32>
    %cst_160 = arith.constant dense<0.000000e+00> : vector<8x8xf32>
    %173 = vector.multi_reduction <add>, %172, %cst_160 [2] : vector<8x8x32xf32> to vector<8x8xf32>
    %174 = tpu.iota {dimensions = array<i32: 1>} : vector<8x8xi32>
    %c2_i32_161 = arith.constant 2 : i32
    %175 = vector.broadcast %c2_i32_161 : i32 to vector<8x8xi32>
    %176 = arith.cmpi slt, %174, %175 : vector<8x8xi32>
    %cst_162 = arith.constant -1.000000e+30 : f32
    %177 = vector.broadcast %cst_162 : f32 to vector<8x8xf32>
    %178 = arith.select %176, %173, %177 : vector<8x8xi1>, vector<8x8xf32>
    %cst_163 = arith.constant dense<0xFF800000> : vector<8xf32>
    %179 = vector.multi_reduction <maximumf>, %178, %cst_163 [1] : vector<8x8xf32> to vector<8xf32>
    %180 = vector.shape_cast %179 : vector<8xf32> to vector<8x1xf32>
    %181 = vector.broadcast %180 : vector<8x1xf32> to vector<8x8xf32>
    %182 = arith.subf %178, %181 : vector<8x8xf32>
    %183 = math.exp %182 : vector<8x8xf32>
    %cst_164 = arith.constant dense<0.000000e+00> : vector<8xf32>
    %184 = vector.multi_reduction <add>, %183, %cst_164 [1] : vector<8x8xf32> to vector<8xf32>
    %185 = vector.shape_cast %184 : vector<8xf32> to vector<8x1xf32>
    %186 = tpu.reciprocal %185 {approx = true} : vector<8x1xf32> -> vector<8x1xf32>
    %187 = vector.broadcast %186 : vector<8x1xf32> to vector<8x8xf32>
    %188 = arith.mulf %183, %187 : vector<8x8xf32>
    %189 = vector.shape_cast %188 : vector<8x8xf32> to vector<8x8x1xf32>
    %190 = vector.broadcast %189 : vector<8x8x1xf32> to vector<8x8x32xf32>
    %191 = arith.mulf %167, %190 : vector<8x8x32xf32>
    %cst_165 = arith.constant dense<0.000000e+00> : vector<8x32xf32>
    %192 = vector.multi_reduction <add>, %191, %cst_165 [0] : vector<8x8x32xf32> to vector<8x32xf32>
    %193 = arith.truncf %192 : vector<8x32xf32> to vector<8x32xbf16>
    %c0_166 = arith.constant 0 : index
    %c0_167 = arith.constant 0 : index
    %194 = vector.load %arg10[%c0_166, %c0_167] : memref<32x64xbf16, #tpu.memory_space<vmem>>, vector<32x64xbf16>
    %cst_168 = arith.constant dense<0.000000e+00> : vector<8x64xf32>
    %195 = tpu.matmul %193, %194, %cst_168 {dimension_numbers = #tpu.dot_dimension_numbers<[1], [0], [0], [1], [0, 0, 1, 1], [], []>} : vector<8x32xbf16>, vector<32x64xbf16>, vector<8x64xf32> -> vector<8x64xf32>
    %c0_169 = arith.constant 0 : index
    %c0_170 = arith.constant 0 : index
    %196 = vector.load %arg11[%c0_169, %c0_170] : memref<1x64xf32, #tpu.memory_space<vmem>>, vector<1x64xf32>
    %197 = vector.broadcast %196 : vector<1x64xf32> to vector<8x64xf32>
    %198 = arith.addf %195, %197 : vector<8x64xf32>
    %cst_171 = arith.constant 0.000000e+00 : f32
    %199 = vector.broadcast %cst_171 : f32 to vector<8x64xf32>
    %200 = arith.maximumf %198, %199 : vector<8x64xf32>
    %201 = arith.truncf %200 : vector<8x64xf32> to vector<8x64xbf16>
    %c0_172 = arith.constant 0 : index
    %c0_173 = arith.constant 0 : index
    %202 = vector.load %arg12[%c0_172, %c0_173] : memref<64x4xbf16, #tpu.memory_space<vmem>>, vector<64x4xbf16>
    %cst_174 = arith.constant dense<0.000000e+00> : vector<8x4xf32>
    %203 = tpu.matmul %201, %202, %cst_174 {dimension_numbers = #tpu.dot_dimension_numbers<[1], [0], [0], [1], [0, 0, 1, 1], [], []>} : vector<8x64xbf16>, vector<64x4xbf16>, vector<8x4xf32> -> vector<8x4xf32>
    %c0_175 = arith.constant 0 : index
    %c0_176 = arith.constant 0 : index
    %204 = vector.load %arg13[%c0_175, %c0_176] : memref<1x4xf32, #tpu.memory_space<vmem>>, vector<1x4xf32>
    %205 = vector.broadcast %204 : vector<1x4xf32> to vector<8x4xf32>
    %206 = arith.addf %203, %205 : vector<8x4xf32>
    %c0_177 = arith.constant 0 : index
    %c0_178 = arith.constant 0 : index
    %207 = vector.load %arg14[%c0_177, %c0_178] : memref<8x4xf32, #tpu.memory_space<vmem>>, vector<8x4xf32>
    tpu.vector_store %arg14[%c0_177, %c0_178], %206 {strides = array<i32>} : memref<8x4xf32, #tpu.memory_space<vmem>>, vector<8x4xf32>,
    return
  }
}

</mosaic_0001>

<bundles_post_ra>
// kernel: lstm_attn_forward.1
= control target key start
LH: loop header
LB: loop body
LE: loop exit
PB: predicated region body
PF: predicated region fallthrough
CT: control target
= control target key end

     0   :  { %s3214_s0 = inlined_call_operand.vmem [shape: bf16[8,8,16], index: 0, kind: input, shape index: {}]   ;;  %s3215_s1 = inlined_call_operand.vmem [shape: bf16[4,16,32], index: 1, kind: input, shape index: {}]   ;;  %s3216_s2 = inlined_call_operand.vmem [shape: bf16[4,32,32], index: 2, kind: input, shape index: {}]   ;;  %s3217_s3 = inlined_call_operand.vmem [shape: f32[4,1,32], index: 3, kind: input, shape index: {}]   ;;  %s3218_s4 = inlined_call_operand.vmem [shape: bf16[4,32,32], index: 4, kind: input, shape index: {}]   ;;  %s3219_s5 = inlined_call_operand.vmem [shape: bf16[4,32,32], index: 5, kind: input, shape index: {}]   ;;  %s3220_s6 = inlined_call_operand.vmem [shape: f32[4,1,32], index: 6, kind: input, shape index: {}]   ;;  %s3221_s7 = inlined_call_operand.vmem [shape: bf16[4,32,32], index: 7, kind: input, shape index: {}]   ;;  %s3222_s8 = inlined_call_operand.vmem [shape: bf16[4,32,32], index: 8, kind: input, shape index: {}]   ;;  %s3223_s9 = inlined_call_operand.vmem [shape: f32[4,1,32], index: 9, kind: input, shape index: {}]   ;;  %s3224_s10 = inlined_call_operand.vmem [shape: bf16[32,64], index: 10, kind: input, shape index: {}]   ;;  %s3225_s11 = inlined_call_operand.vmem [shape: f32[1,64], index: 11, kind: input, shape index: {}]   ;;  %s3226_s12 = inlined_call_operand.vmem [shape: bf16[64,4], index: 12, kind: input, shape index: {}]   ;;  %s3227_s13 = inlined_call_operand.vmem [shape: f32[1,4], index: 13, kind: input, shape index: {}]   ;;  %s3228_s14 = inlined_call_operand.vmem [shape: f32[8,4], index: 14, kind: output, shape index: {}]  }
   0x1   :  { %v50_v0 = vld [vmem:[%s3218_s4] sm:$0xff]  ;;  %v52_v1 = vld [vmem:[%s3218_s4 + $0x8] sm:$0xff]  ;;  %v54_v2 = vld [vmem:[%s3218_s4 + $0x10] sm:$0xff] }
   0x2   :  { %51 = vst [vmem:[#allocation5 + $0x30] sm:$0xff] %v50_v0  ;;  %v56_v3 = vld [vmem:[%s3218_s4 + $0x18] sm:$0xff]  ;;  %v58_v4 = vld [vmem:[%s3218_s4 + $0x20] sm:$0xff]  ;;  %v60_v5 = vld [vmem:[%s3218_s4 + $0x28] sm:$0xff] }
   0x3   :  { %53 = vst [vmem:[#allocation5] sm:$0xff] %v52_v1  ;;  %v62_v6 = vld [vmem:[%s3218_s4 + $0x30] sm:$0xff]  ;;  %v64_v7 = vld [vmem:[%s3218_s4 + $0x38] sm:$0xff] }
   0x4   :  { %55 = vst [vmem:[#allocation5 + $0x18] sm:$0xff] %v54_v2 }
   0x5   :  { %57 = vst [vmem:[#allocation5 + $0x10] sm:$0xff] %v56_v3 }
   0x6   :  { %59 = vst [vmem:[#allocation5 + $0x8] sm:$0xff] %v58_v4 }
   0x7   :  { %61 = vst [vmem:[#allocation5 + $0x20] sm:$0xff] %v60_v5 }
   0x8   :  { %63 = vst [vmem:[#allocation5 + $0x28] sm:$0xff] %v62_v6 }
   0x9   :  { %65 = vst [vmem:[#allocation5 + $0x38] sm:$0xff] %v64_v7 }
   0xa   :  { %71 = vsyncadd [#allocation9], 1024  ;;  %v83_v8 = vld [vmem:[%s3219_s5] sm:$0xff]  ;;  %v85_v9 = vld [vmem:[%s3219_s5 + $0x8] sm:$0xff] }
   0xb   :  { %84 = vst [vmem:[#allocation6] sm:$0xff] %v83_v8  ;;  %v87_v10 = vld [vmem:[%s3219_s5 + $0x10] sm:$0xff]  ;;  %v89_v11 = vld [vmem:[%s3219_s5 + $0x18] sm:$0xff]  ;;  %v91_v12 = vld [vmem:[%s3219_s5 + $0x20] sm:$0xff] }
   0xc   :  { %86 = vst [vmem:[#allocation6 + $0x18] sm:$0xff] %v85_v9  ;;  %v93_v13 = vld [vmem:[%s3219_s5 + $0x28] sm:$0xff]  ;;  %v95_v14 = vld [vmem:[%s3219_s5 + $0x30] sm:$0xff]  ;;  %v97_v15 = vld [vmem:[%s3219_s5 + $0x38] sm:$0xff] }
   0xd   :  { %88 = vst [vmem:[#allocation6 + $0x10] sm:$0xff] %v87_v10 }
   0xe   :  { %90 = vst [vmem:[#allocation6 + $0x20] sm:$0xff] %v89_v11 }
   0xf   :  { %92 = vst [vmem:[#allocation6 + $0x28] sm:$0xff] %v91_v12 }
  0x10   :  { %94 = vst [vmem:[#allocation6 + $0x8] sm:$0xff] %v93_v13 }
  0x11   :  { %96 = vst [vmem:[#allocation6 + $0x30] sm:$0xff] %v95_v14 }
  0x12   :  { %98 = vst [vmem:[#allocation6 + $0x38] sm:$0xff] %v97_v15 }
  0x13   :  { %104 = vsyncadd [#allocation9 + $0x1], 1024  ;;  %v116_v16 = vld [vmem:[%s3221_s7] sm:$0xff]  ;;  %v118_v17 = vld [vmem:[%s3221_s7 + $0x8] sm:$0xff] }
  0x14   :  { %117 = vst [vmem:[#allocation7 + $0x28] sm:$0xff] %v116_v16  ;;  %v120_v18 = vld [vmem:[%s3221_s7 + $0x10] sm:$0xff]  ;;  %v122_v19 = vld [vmem:[%s3221_s7 + $0x18] sm:$0xff]  ;;  %v124_v20 = vld [vmem:[%s3221_s7 + $0x20] sm:$0xff] }
  0x15   :  { %119 = vst [vmem:[#allocation7 + $0x20] sm:$0xff] %v118_v17  ;;  %v126_v21 = vld [vmem:[%s3221_s7 + $0x28] sm:$0xff]  ;;  %v128_v22 = vld [vmem:[%s3221_s7 + $0x30] sm:$0xff]  ;;  %v130_v23 = vld [vmem:[%s3221_s7 + $0x38] sm:$0xff] }
  0x16   :  { %121 = vst [vmem:[#allocation7 + $0x38] sm:$0xff] %v120_v18 }
  0x17   :  { %123 = vst [vmem:[#allocation7 + $0x10] sm:$0xff] %v122_v19 }
  0x18   :  { %125 = vst [vmem:[#allocation7 + $0x8] sm:$0xff] %v124_v20 }
  0x19   :  { %127 = vst [vmem:[#allocation7 + $0x30] sm:$0xff] %v126_v21 }
  0x1a   :  { %129 = vst [vmem:[#allocation7 + $0x18] sm:$0xff] %v128_v22 }
  0x1b   :  { %131 = vst [vmem:[#allocation7] sm:$0xff] %v130_v23 }
  0x1c   :  { %137 = vsyncadd [#allocation9 + $0x2], 1024  ;;  %v149_v24 = vld [vmem:[%s3222_s8] sm:$0xff]  ;;  %v151_v25 = vld [vmem:[%s3222_s8 + $0x8] sm:$0xff] }
  0x1d   :  { %150 = vst [vmem:[#allocation8 + $0x8] sm:$0xff] %v149_v24  ;;  %v153_v26 = vld [vmem:[%s3222_s8 + $0x10] sm:$0xff]  ;;  %v155_v27 = vld [vmem:[%s3222_s8 + $0x18] sm:$0xff]  ;;  %v157_v28 = vld [vmem:[%s3222_s8 + $0x20] sm:$0xff] }
  0x1e   :  { %152 = vst [vmem:[#allocation8] sm:$0xff] %v151_v25  ;;  %v159_v29 = vld [vmem:[%s3222_s8 + $0x28] sm:$0xff]  ;;  %v161_v30 = vld [vmem:[%s3222_s8 + $0x30] sm:$0xff]  ;;  %v163_v31 = vld [vmem:[%s3222_s8 + $0x38] sm:$0xff] }
  0x1f   :  { %154 = vst [vmem:[#allocation8 + $0x10] sm:$0xff] %v153_v26 }
  0x20   :  { %156 = vst [vmem:[#allocation8 + $0x20] sm:$0xff] %v155_v27 }
  0x21   :  { %158 = vst [vmem:[#allocation8 + $0x30] sm:$0xff] %v157_v28 }
  0x22   :  { %160 = vst [vmem:[#allocation8 + $0x18] sm:$0xff] %v159_v29 }
  0x23   :  { %162 = vst [vmem:[#allocation8 + $0x28] sm:$0xff] %v161_v30 }
  0x24   :  { %164 = vst [vmem:[#allocation8 + $0x38] sm:$0xff] %v163_v31 }
  0x25   :  { %170 = vsyncadd [#allocation9 + $0x3], 1024  ;;  %v2240_v32 = vld [vmem:[%s3215_s1] sm:$0xff]  ;;  %v2241_v33 = vld [vmem:[%s3215_s1 + $0x8] sm:$0xff]  ;;  %vm211_vm0 = vcmask 130048   ;;  %vm253_vm1 = vcmask 261120  }
  0x26   :  { %v2242_v34 = vld [vmem:[%s3215_s1 + $0x10] sm:$0xff]  ;;  %v2243_v35 = vld [vmem:[%s3215_s1 + $0x18] sm:$0xff]  ;;  %v2236_v36 = vld [vmem:[%s3214_s0] sm:$0xff]  ;;  %231 = vmatpush.bf16.msra.mxu0 %v2240_v32  ;;  %283 = vmatpush.bf16.msra.mxu1 %v2241_v33 }
  0x27   :  { %335 = vmatpush.bf16.msra.mxu2 %v2242_v34  ;;  %387 = vmatpush.bf16.msra.mxu3 %v2243_v35  ;;  %v2237_v37 = vld [vmem:[%s3214_s0 + $0x8] sm:$0xff]  ;;  %v2238_v38 = vld [vmem:[%s3214_s0 + $0x10] sm:$0xff]  ;;  %v2239_v39 = vld [vmem:[%s3214_s0 + $0x18] sm:$0xff] }
  0x28   :  { %v2734_v40 = vld [vmem:[%s3217_s3] ss:$0 sm:$0xff]  ;;  %v2739_v41 = vld [vmem:[%s3217_s3 + $0x1] ss:$0 sm:$0xff]  ;;  %v2748_v46 = vld [vmem:[%s3217_s3 + $0x2] ss:$0 sm:$0xff] }
  0x29   :  { %1891 = vmatmul.msk.bf16.vlgmr.msra.gmra.mxu0 %vm211_vm0, %v2236_v36  ;;  %1902 = vmatmul.msk.bf16.vlgmr.msra.gmra.mxu1 %vm211_vm0, %v2236_v36  ;;  %v2753_v47 = vld [vmem:[%s3217_s3 + $0x3] ss:$0 sm:$0xff]  ;;  %s2819_s3 = smov 0  }
  0x2a   :  { %1913 = vmatmul.msk.bf16.vlgmr.msra.gmra.mxu2 %vm211_vm0, %v2236_v36  ;;  %1924 = vmatmul.msk.bf16.vlgmr.msra.gmra.mxu3 %vm211_vm0, %v2236_v36 }
  0x39   :  { %1892 = vmatmul.msk.bf16.gmra.mxu0 %vm211_vm0, %v2237_v37  ;;  %1903 = vmatmul.msk.bf16.gmra.mxu1 %vm211_vm0, %v2237_v37 }
  0x3a   :  { %1914 = vmatmul.msk.bf16.gmra.mxu2 %vm211_vm0, %v2237_v37  ;;  %1925 = vmatmul.msk.bf16.gmra.mxu3 %vm211_vm0, %v2237_v37 }
  0x49   :  { %1893 = vmatmul.msk.bf16.gmra.mxu0 %vm211_vm0, %v2238_v38  ;;  %1904 = vmatmul.msk.bf16.gmra.mxu1 %vm211_vm0, %v2238_v38 }
  0x4a   :  { %1915 = vmatmul.msk.bf16.gmra.mxu2 %vm211_vm0, %v2238_v38  ;;  %1926 = vmatmul.msk.bf16.gmra.mxu3 %vm211_vm0, %v2238_v38 }
  0x59   :  { %1894 = vmatmul.msk.bf16.gmra.mxu0 %vm211_vm0, %v2239_v39  ;;  %1905 = vmatmul.msk.bf16.gmra.mxu1 %vm211_vm0, %v2239_v39 }
  0x5a   :  { %1916 = vmatmul.msk.bf16.gmra.mxu2 %vm211_vm0, %v2239_v39  ;;  %1927 = vmatmul.msk.bf16.gmra.mxu3 %vm211_vm0, %v2239_v39 }
  0xa6   :  { %v233_v42 = vpop.f32.mrf.mxu0  ;;  %v285_v43 = vpop.f32.mrf.mxu1 }
  0xa7   :  { %v234_v44 = vadd.f32 %v2734_v40, %v233_v42  ;;  %v286_v45 = vadd.f32 %v2739_v41, %v285_v43 }
  0xa9   :  { %254 = vst.msk [vmem:[#allocation2] sm:$0xff] %vm253_vm1, %v234_v44 }
  0xaa   :  { %306 = vst.msk [vmem:[#allocation2 + $0x40] sm:$0xff] %vm253_vm1, %v286_v45 }
  0xad   :  { %v337_v48 = vpop.f32.mrf.mxu2  ;;  %v389_v49 = vpop.f32.mrf.mxu3 }
  0xae   :  { %v338_v50 = vadd.f32 %v2748_v46, %v337_v48  ;;  %v390_v51 = vadd.f32 %v2753_v47, %v389_v49  ;;  %v235_v52 = vpop.f32.mrf.mxu0  ;;  %v287_v53 = vpop.f32.mrf.mxu1 }
  0xaf   :  { %v236_v54 = vadd.f32 %v2734_v40, %v235_v52  ;;  %v288_v55 = vadd.f32 %v2739_v41, %v287_v53 }
  0xb0   :  { %358 = vst.msk [vmem:[#allocation2 + $0x80] sm:$0xff] %vm253_vm1, %v338_v50 }
  0xb1   :  { %410 = vst.msk [vmem:[#allocation2 + $0xc0] sm:$0xff] %vm253_vm1, %v390_v51 }
  0xb2   :  { %255 = vst.msk [vmem:[#allocation2 + $0x8] sm:$0xff] %vm253_vm1, %v236_v54 }
  0xb3   :  { %307 = vst.msk [vmem:[#allocation2 + $0x48] sm:$0xff] %vm253_vm1, %v288_v55 }
  0xb5   :  { %v339_v56 = vpop.f32.mrf.mxu2  ;;  %v391_v57 = vpop.f32.mrf.mxu3 }
  0xb6   :  { %v340_v58 = vadd.f32 %v2748_v46, %v339_v56  ;;  %v392_v59 = vadd.f32 %v2753_v47, %v391_v57  ;;  %v238_v60 = vpop.f32.mrf.mxu0  ;;  %v290_v61 = vpop.f32.mrf.mxu1 }
  0xb7   :  { %v239_v62 = vadd.f32 %v2734_v40, %v238_v60  ;;  %v291_v63 = vadd.f32 %v2739_v41, %v290_v61 }
  0xb8   :  { %359 = vst.msk [vmem:[#allocation2 + $0x88] sm:$0xff] %vm253_vm1, %v340_v58 }
  0xb9   :  { %411 = vst.msk [vmem:[#allocation2 + $0xc8] sm:$0xff] %vm253_vm1, %v392_v59 }
  0xba   :  { %256 = vst.msk [vmem:[#allocation2 + $0x10] sm:$0xff] %vm253_vm1, %v239_v62 }
  0xbb   :  { %308 = vst.msk [vmem:[#allocation2 + $0x50] sm:$0xff] %vm253_vm1, %v291_v63 }
  0xbd   :  { %v342_v0 = vpop.f32.mrf.mxu2  ;;  %v394_v1 = vpop.f32.mrf.mxu3 }
  0xbe   :  { %v343_v2 = vadd.f32 %v2748_v46, %v342_v0  ;;  %v395_v3 = vadd.f32 %v2753_v47, %v394_v1  ;;  %v240_v4 = vpop.f32.mrf.mxu0  ;;  %v292_v5 = vpop.f32.mrf.mxu1 }
  0xbf   :  { %v241_v6 = vadd.f32 %v2734_v40, %v240_v4  ;;  %v293_v7 = vadd.f32 %v2739_v41, %v292_v5 }
  0xc0   :  { %360 = vst.msk [vmem:[#allocation2 + $0x90] sm:$0xff] %vm253_vm1, %v343_v2 }
  0xc1   :  { %412 = vst.msk [vmem:[#allocation2 + $0xd0] sm:$0xff] %vm253_vm1, %v395_v3 }
  0xc2   :  { %257 = vst.msk [vmem:[#allocation2 + $0x18] sm:$0xff] %vm253_vm1, %v241_v6 }
  0xc3   :  { %309 = vst.msk [vmem:[#allocation2 + $0x58] sm:$0xff] %vm253_vm1, %v293_v7 }
  0xc5   :  { %v344_v8 = vpop.f32.mrf.mxu2  ;;  %v396_v9 = vpop.f32.mrf.mxu3 }
  0xc6   :  { %v345_v10 = vadd.f32 %v2748_v46, %v344_v8  ;;  %v397_v11 = vadd.f32 %v2753_v47, %v396_v9  ;;  %v243_v12 = vpop.f32.mrf.mxu0  ;;  %v295_v13 = vpop.f32.mrf.mxu1 }
  0xc7   :  { %v244_v14 = vadd.f32 %v2734_v40, %v243_v12  ;;  %v296_v15 = vadd.f32 %v2739_v41, %v295_v13 }
  0xc8   :  { %361 = vst.msk [vmem:[#allocation2 + $0x98] sm:$0xff] %vm253_vm1, %v345_v10 }
  0xc9   :  { %413 = vst.msk [vmem:[#allocation2 + $0xd8] sm:$0xff] %vm253_vm1, %v397_v11 }
  0xca   :  { %258 = vst.msk [vmem:[#allocation2 + $0x20] sm:$0xff] %vm253_vm1, %v244_v14 }
  0xcb   :  { %310 = vst.msk [vmem:[#allocation2 + $0x60] sm:$0xff] %vm253_vm1, %v296_v15 }
  0xcd   :  { %v347_v16 = vpop.f32.mrf.mxu2  ;;  %v399_v17 = vpop.f32.mrf.mxu3 }
  0xce   :  { %v348_v18 = vadd.f32 %v2748_v46, %v347_v16  ;;  %v400_v19 = vadd.f32 %v2753_v47, %v399_v17  ;;  %v245_v20 = vpop.f32.mrf.mxu0  ;;  %v297_v21 = vpop.f32.mrf.mxu1 }
  0xcf   :  { %v246_v22 = vadd.f32 %v2734_v40, %v245_v20  ;;  %v298_v23 = vadd.f32 %v2739_v41, %v297_v21 }
  0xd0   :  { %362 = vst.msk [vmem:[#allocation2 + $0xa0] sm:$0xff] %vm253_vm1, %v348_v18 }
  0xd1   :  { %414 = vst.msk [vmem:[#allocation2 + $0xe0] sm:$0xff] %vm253_vm1, %v400_v19 }
  0xd2   :  { %259 = vst.msk [vmem:[#allocation2 + $0x28] sm:$0xff] %vm253_vm1, %v246_v22 }
  0xd3   :  { %311 = vst.msk [vmem:[#allocation2 + $0x68] sm:$0xff] %vm253_vm1, %v298_v23 }
  0xd5   :  { %v349_v24 = vpop.f32.mrf.mxu2  ;;  %v401_v25 = vpop.f32.mrf.mxu3 }
  0xd6   :  { %v350_v26 = vadd.f32 %v2748_v46, %v349_v24  ;;  %v402_v27 = vadd.f32 %v2753_v47, %v401_v25  ;;  %v248_v28 = vpop.f32.mrf.mxu0  ;;  %v300_v29 = vpop.f32.mrf.mxu1 }
  0xd7   :  { %v249_v30 = vadd.f32 %v2734_v40, %v248_v28  ;;  %v301_v31 = vadd.f32 %v2739_v41, %v300_v29 }
  0xd8   :  { %363 = vst.msk [vmem:[#allocation2 + $0xa8] sm:$0xff] %vm253_vm1, %v350_v26 }
  0xd9   :  { %415 = vst.msk [vmem:[#allocation2 + $0xe8] sm:$0xff] %vm253_vm1, %v402_v27 }
  0xda   :  { %260 = vst.msk [vmem:[#allocation2 + $0x30] sm:$0xff] %vm253_vm1, %v249_v30 }
  0xdb   :  { %312 = vst.msk [vmem:[#allocation2 + $0x70] sm:$0xff] %vm253_vm1, %v301_v31 }
  0xdd   :  { %v352_v32 = vpop.f32.mrf.mxu2  ;;  %v404_v33 = vpop.f32.mrf.mxu3 }
  0xde   :  { %v353_v34 = vadd.f32 %v2748_v46, %v352_v32  ;;  %v405_v35 = vadd.f32 %v2753_v47, %v404_v33  ;;  %v250_v36 = vpop.f32.mrf.mxu0  ;;  %v302_v37 = vpop.f32.mrf.mxu1 }
  0xdf   :  { %v251_v38 = vadd.f32 %v2734_v40, %v250_v36  ;;  %v303_v39 = vadd.f32 %v2739_v41, %v302_v37  ;;  %v2815_v40 = vmov 0.0   ;;  %v2817_v41 = vmov 0  }
  0xe0   :  { %364 = vst.msk [vmem:[#allocation2 + $0xb0] sm:$0xff] %vm253_vm1, %v353_v34 }
  0xe1   :  { %416 = vst.msk [vmem:[#allocation2 + $0xf0] sm:$0xff] %vm253_vm1, %v405_v35 }
  0xe2   :  { %261 = vst.msk [vmem:[#allocation2 + $0x38] sm:$0xff] %vm253_vm1, %v251_v38 }
  0xe3   :  { %313 = vst.msk [vmem:[#allocation2 + $0x78] sm:$0xff] %vm253_vm1, %v303_v39 }
  0xe5   :  { %v354_v42 = vpop.f32.mrf.mxu2  ;;  %v406_v43 = vpop.f32.mrf.mxu3 }
  0xe6   :  { %v355_v44 = vadd.f32 %v2748_v46, %v354_v42  ;;  %v407_v45 = vadd.f32 %v2753_v47, %v406_v43 }
  0xe8   :  { %365 = vst.msk [vmem:[#allocation2 + $0xb8] sm:$0xff] %vm253_vm1, %v355_v44 }
  0xe9   :  { %417 = vst.msk [vmem:[#allocation2 + $0xf8] sm:$0xff] %vm253_vm1, %v407_v45 }
  0xea LB: > { %v2245_v46 = vld [vmem:[%s3216_s2 + $0x8] sm:$0xff]  ;;  %v2247_v47 = vld [vmem:[%s3216_s2 + $0x18] sm:$0xff]  ;;  %v2244_v50 = vld [vmem:[%s3216_s2] sm:$0xff]  ;;  %s1928_s4 = sshll.u32 %s2494_s3, 3  ;;  %s1983_s0 = sshll.u32 %s2494_s3, 2  ;;  %vm585_vm2 = vcmask 257024   ;;  %s2494_s3 = sphi %s2819_s3, %s423_s3   ;;  %v2490_v41 = vphi %v2817_v41, %v582_v41   ;;  %v2486_v40 = vphi %v2815_v40, %v541_v40  }
  0xeb   : > { %v2249_v48 = vld [vmem:[%s3216_s2 + $0x28] sm:$0xff]  ;;  %v2251_v49 = vld [vmem:[%s3216_s2 + $0x38] sm:$0xff]  ;;  %454 = vmatpush.bf16.msra.mxu0 %v2245_v46  ;;  %492 = vmatpush.bf16.msra.mxu1 %v2247_v47  ;;  %v2246_v51 = vld [vmem:[%s3216_s2 + $0x10] sm:$0xff]  ;;  %s427_s21 = scalar_lea.vmem [#allocation2], %s1928_s4  ;;  %s584_s22 = scalar_lea.vmem [#allocation3], %s1983_s0 }
  0xec   : > { %531 = vmatpush.bf16.msra.mxu2 %v2249_v48  ;;  %568 = vmatpush.bf16.msra.mxu3 %v2251_v49  ;;  %v2248_v52 = vld [vmem:[%s3216_s2 + $0x20] sm:$0xff]  ;;  %v2250_v53 = vld [vmem:[%s3216_s2 + $0x30] sm:$0xff]  ;;  %s423_s3 = sadd.s32 1, %s2494_s3  }
  0xed   : > { %p420_p0 = scmp.ge.s32.totalorder %s423_s3, 8  }
  0xef   : > { %455 = vmatpush.bf16.msra.mxu0 %v2244_v50  ;;  %493 = vmatpush.bf16.msra.mxu1 %v2246_v51 }
  0xf0   : > { %532 = vmatpush.bf16.msra.mxu2 %v2248_v52  ;;  %569 = vmatpush.bf16.msra.mxu3 %v2250_v53  ;;  %v428_v54 = vld [vmem:[%s427_s21] sm:$0xff] }
  0xf1   : > { %v1939_v55 = vld [vmem:[%s427_s21 + $0x40] sm:$0xff] }
  0xf2   : > { %1937 = vmatmul.msk.bf16.vlgmr.msra.gmra.mxu0 %vm253_vm1, %v2490_v41  ;;  %1952 = vmatmul.msk.bf16.vlgmr.msra.gmra.mxu1 %vm253_vm1, %v2490_v41  ;;  %v1954_v62 = vld [vmem:[%s427_s21 + $0x80] sm:$0xff] }
  0xf3   : > { %1967 = vmatmul.msk.bf16.vlgmr.msra.gmra.mxu2 %vm253_vm1, %v2490_v41  ;;  %1982 = vmatmul.msk.bf16.vlgmr.msra.gmra.mxu3 %vm253_vm1, %v2490_v41  ;;  %v1969_v63 = vld [vmem:[%s427_s21 + $0xc0] sm:$0xff] }
 0x16f   : > { %v457_v56 = vpop.f32.mrf.mxu0  ;;  %v495_v57 = vpop.f32.mrf.mxu1 }
 0x170   : > { %v461_v58 = vadd.f32 %v457_v56, %v428_v54  ;;  %v499_v59 = vadd.f32 %v1939_v55, %v495_v57 }
 0x172   : > { %v462_v60 = vmul.f32 0.5, %v461_v58  ;;  %v500_v61 = vmul.f32 0.5, %v499_v59 }
 0x174   : > { %2393 = vtanh.f32 %v462_v60 }
 0x175   : > { %2395 = vtanh.f32 %v500_v61 }
 0x176   : > { %v534_v0 = vpop.f32.mrf.mxu2  ;;  %v571_v1 = vpop.f32.mrf.mxu3 }
 0x177   : > { %v538_v2 = vadd.f32 %v1954_v62, %v534_v0  ;;  %v575_v3 = vadd.f32 %v1969_v63, %v571_v1  ;;  %v459_v4 = vpop.f32.mrf.mxu0  ;;  %v497_v5 = vpop.f32.mrf.mxu1 }
 0x179   : > { %2397 = vtanh.f32 %v538_v2  ;;  %v576_v6 = vmul.f32 0.5, %v575_v3 }
 0x17a   : > { %v2394_v7 = vpop.eup %2393 }
 0x17b   : > { %v2396_v8 = vpop.eup %2395  ;;  %v464_v9 = vmul.f32 0.5, %v2394_v7  ;;  %2399 = vtanh.f32 %v576_v6 }
 0x17c   : > { %v502_v10 = vmul.f32 0.5, %v2396_v8 }
 0x17d   : > { %v465_v11 = vadd.f32 0.5, %v464_v9 }
 0x17e   : > { %v503_v12 = vadd.f32 0.5, %v502_v10  ;;  %v536_v13 = vpop.f32.mrf.mxu2  ;;  %v573_v14 = vpop.f32.mrf.mxu3 }
 0x17f   : > { %v2398_v15 = vpop.eup %2397 }
 0x180   : > { %v504_v16 = vmul.f32 %v2486_v40, %v503_v12  ;;  %v540_v17 = vmul.f32 %v2398_v15, %v465_v11 }
 0x181   : > { %v2400_v18 = vpop.eup %2399 }
 0x182   : > { %v541_v40 = vadd.f32 %v540_v17, %v504_v16   ;;  %v578_v19 = vmul.f32 0.5, %v2400_v18 }
 0x184   : > { %2401 = vtanh.f32 %v541_v40  ;;  %v579_v20 = vadd.f32 0.5, %v578_v19 }
 0x18a   : > { %v2402_v21 = vpop.eup %2401 }
 0x18b   : > { %v581_v22 = vmul.f32 %v2402_v21, %v579_v20  ;;  %422 = sbr.rel (!%p420_p0) target bundleno = 234 (0xea), region = 224 }
 0x18d   : > { %v582_v41 = vpack.c.bf16 %v581_v22, %v581_v22  }
 0x18f   : > { %586 = vst.msk [vmem:[%s584_s22] sm:$0xf] %vm585_vm2, %v582_v41 }
 0x190   :  { %2476 = dma.done.wait [#allocation9], 1024 }
 0x191   :  { %2477 = vsyncadd [#allocation9], 4294966272  ;;  %v2257_v23 = vld [vmem:[#allocation5] sm:$0xff]  ;;  %v2259_v24 = vld [vmem:[#allocation5 + $0x10] sm:$0xff] }
 0x192   :  { %v2261_v25 = vld [vmem:[#allocation5 + $0x20] sm:$0xff]  ;;  %v2263_v26 = vld [vmem:[#allocation5 + $0x38] sm:$0xff]  ;;  %658 = vmatpush.bf16.msra.mxu0 %v2257_v23  ;;  %717 = vmatpush.bf16.msra.mxu1 %v2259_v24  ;;  %v2256_v27 = vld [vmem:[#allocation5 + $0x30] sm:$0xff] }
 0x193   :  { %v2258_v28 = vld [vmem:[#allocation5 + $0x18] sm:$0xff]  ;;  %776 = vmatpush.bf16.msra.mxu2 %v2261_v25  ;;  %835 = vmatpush.bf16.msra.mxu3 %v2263_v26  ;;  %v2260_v29 = vld [vmem:[#allocation5 + $0x8] sm:$0xff]  ;;  %v2883_v35 = vld [vmem:[%s3220_s6] ss:$0 sm:$0xff] }
 0x194   :  { %v2262_v30 = vld [vmem:[#allocation5 + $0x28] sm:$0xff]  ;;  %v2888_v36 = vld [vmem:[%s3220_s6 + $0x1] ss:$0 sm:$0xff]  ;;  %v2897_v43 = vld [vmem:[%s3220_s6 + $0x2] ss:$0 sm:$0xff] }
 0x195   :  { %v2902_v44 = vld [vmem:[%s3220_s6 + $0x3] ss:$0 sm:$0xff] }
 0x196   :  { %v2252_v31 = vld [vmem:[#allocation3] sm:$0xff]  ;;  %659 = vmatpush.bf16.msra.mxu0 %v2256_v27  ;;  %718 = vmatpush.bf16.msra.mxu1 %v2258_v28  ;;  %v2253_v32 = vld [vmem:[#allocation3 + $0x8] sm:$0xff]  ;;  %v2254_v33 = vld [vmem:[#allocation3 + $0x10] sm:$0xff] }
 0x197   :  { %777 = vmatpush.bf16.msra.mxu2 %v2260_v29  ;;  %836 = vmatpush.bf16.msra.mxu3 %v2262_v30  ;;  %v2255_v34 = vld [vmem:[#allocation3 + $0x18] sm:$0xff] }
 0x199   :  { %2008 = vmatmul.msk.bf16.vlgmr.msra.gmra.mxu0 %vm253_vm1, %v2252_v31  ;;  %2021 = vmatmul.msk.bf16.vlgmr.msra.gmra.mxu1 %vm253_vm1, %v2252_v31 }
 0x19a   :  { %2034 = vmatmul.msk.bf16.vlgmr.msra.gmra.mxu2 %vm253_vm1, %v2252_v31  ;;  %2047 = vmatmul.msk.bf16.vlgmr.msra.gmra.mxu3 %vm253_vm1, %v2252_v31 }
 0x1a9   :  { %2009 = vmatmul.msk.bf16.gmra.mxu0 %vm253_vm1, %v2253_v32  ;;  %2022 = vmatmul.msk.bf16.gmra.mxu1 %vm253_vm1, %v2253_v32 }
 0x1aa   :  { %2035 = vmatmul.msk.bf16.gmra.mxu2 %vm253_vm1, %v2253_v32  ;;  %2048 = vmatmul.msk.bf16.gmra.mxu3 %vm253_vm1, %v2253_v32 }
 0x1b9   :  { %2010 = vmatmul.msk.bf16.gmra.mxu0 %vm253_vm1, %v2254_v33  ;;  %2023 = vmatmul.msk.bf16.gmra.mxu1 %vm253_vm1, %v2254_v33 }
 0x1ba   :  { %2036 = vmatmul.msk.bf16.gmra.mxu2 %vm253_vm1, %v2254_v33  ;;  %2049 = vmatmul.msk.bf16.gmra.mxu3 %vm253_vm1, %v2254_v33 }
 0x1c9   :  { %2011 = vmatmul.msk.bf16.gmra.mxu0 %vm253_vm1, %v2255_v34  ;;  %2024 = vmatmul.msk.bf16.gmra.mxu1 %vm253_vm1, %v2255_v34 }
 0x1ca   :  { %2037 = vmatmul.msk.bf16.gmra.mxu2 %vm253_vm1, %v2255_v34  ;;  %2050 = vmatmul.msk.bf16.gmra.mxu3 %vm253_vm1, %v2255_v34 }
 0x216   :  { %v661_v37 = vpop.f32.mrf.mxu0  ;;  %v720_v38 = vpop.f32.mrf.mxu1 }
 0x217   :  { %v662_v39 = vadd.f32 %v2883_v35, %v661_v37  ;;  %v721_v42 = vadd.f32 %v2888_v36, %v720_v38 }
 0x219   :  { %681 = vst.msk [vmem:[#allocation2] sm:$0xff] %vm253_vm1, %v662_v39 }
 0x21a   :  { %740 = vst.msk [vmem:[#allocation2 + $0x40] sm:$0xff] %vm253_vm1, %v721_v42 }
 0x21d   :  { %v779_v45 = vpop.f32.mrf.mxu2  ;;  %v838_v40 = vpop.f32.mrf.mxu3 }
 0x21e   :  { %v780_v41 = vadd.f32 %v2897_v43, %v779_v45  ;;  %v839_v46 = vadd.f32 %v2902_v44, %v838_v40  ;;  %v663_v47 = vpop.f32.mrf.mxu0  ;;  %v722_v48 = vpop.f32.mrf.mxu1 }
 0x21f   :  { %v664_v49 = vadd.f32 %v2883_v35, %v663_v47  ;;  %v723_v50 = vadd.f32 %v2888_v36, %v722_v48 }
 0x220   :  { %799 = vst.msk [vmem:[#allocation2 + $0x80] sm:$0xff] %vm253_vm1, %v780_v41 }
 0x221   :  { %858 = vst.msk [vmem:[#allocation2 + $0xc0] sm:$0xff] %vm253_vm1, %v839_v46 }
 0x222   :  { %682 = vst.msk [vmem:[#allocation2 + $0x8] sm:$0xff] %vm253_vm1, %v664_v49 }
 0x223   :  { %741 = vst.msk [vmem:[#allocation2 + $0x48] sm:$0xff] %vm253_vm1, %v723_v50 }
 0x225   :  { %v781_v51 = vpop.f32.mrf.mxu2  ;;  %v840_v52 = vpop.f32.mrf.mxu3 }
 0x226   :  { %v782_v53 = vadd.f32 %v2897_v43, %v781_v51  ;;  %v841_v54 = vadd.f32 %v2902_v44, %v840_v52  ;;  %v666_v55 = vpop.f32.mrf.mxu0  ;;  %v725_v56 = vpop.f32.mrf.mxu1 }
 0x227   :  { %v667_v57 = vadd.f32 %v2883_v35, %v666_v55  ;;  %v726_v58 = vadd.f32 %v2888_v36, %v725_v56 }
 0x228   :  { %800 = vst.msk [vmem:[#allocation2 + $0x88] sm:$0xff] %vm253_vm1, %v782_v53 }
 0x229   :  { %859 = vst.msk [vmem:[#allocation2 + $0xc8] sm:$0xff] %vm253_vm1, %v841_v54 }
 0x22a   :  { %683 = vst.msk [vmem:[#allocation2 + $0x10] sm:$0xff] %vm253_vm1, %v667_v57 }
 0x22b   :  { %742 = vst.msk [vmem:[#allocation2 + $0x50] sm:$0xff] %vm253_vm1, %v726_v58 }
 0x22d   :  { %v784_v59 = vpop.f32.mrf.mxu2  ;;  %v843_v60 = vpop.f32.mrf.mxu3 }
 0x22e   :  { %v785_v61 = vadd.f32 %v2897_v43, %v784_v59  ;;  %v844_v62 = vadd.f32 %v2902_v44, %v843_v60  ;;  %v668_v63 = vpop.f32.mrf.mxu0  ;;  %v727_v0 = vpop.f32.mrf.mxu1 }
 0x22f   :  { %v669_v1 = vadd.f32 %v2883_v35, %v668_v63  ;;  %v728_v2 = vadd.f32 %v2888_v36, %v727_v0 }
 0x230   :  { %801 = vst.msk [vmem:[#allocation2 + $0x90] sm:$0xff] %vm253_vm1, %v785_v61 }
 0x231   :  { %860 = vst.msk [vmem:[#allocation2 + $0xd0] sm:$0xff] %vm253_vm1, %v844_v62 }
 0x232   :  { %684 = vst.msk [vmem:[#allocation2 + $0x18] sm:$0xff] %vm253_vm1, %v669_v1 }
 0x233   :  { %743 = vst.msk [vmem:[#allocation2 + $0x58] sm:$0xff] %vm253_vm1, %v728_v2 }
 0x235   :  { %v786_v3 = vpop.f32.mrf.mxu2  ;;  %v845_v4 = vpop.f32.mrf.mxu3 }
 0x236   :  { %v787_v5 = vadd.f32 %v2897_v43, %v786_v3  ;;  %v846_v6 = vadd.f32 %v2902_v44, %v845_v4  ;;  %v671_v7 = vpop.f32.mrf.mxu0  ;;  %v730_v8 = vpop.f32.mrf.mxu1 }
 0x237   :  { %v672_v9 = vadd.f32 %v2883_v35, %v671_v7  ;;  %v731_v10 = vadd.f32 %v2888_v36, %v730_v8 }
 0x238   :  { %802 = vst.msk [vmem:[#allocation2 + $0x98] sm:$0xff] %vm253_vm1, %v787_v5 }
 0x239   :  { %861 = vst.msk [vmem:[#allocation2 + $0xd8] sm:$0xff] %vm253_vm1, %v846_v6 }
 0x23a   :  { %685 = vst.msk [vmem:[#allocation2 + $0x20] sm:$0xff] %vm253_vm1, %v672_v9 }
 0x23b   :  { %744 = vst.msk [vmem:[#allocation2 + $0x60] sm:$0xff] %vm253_vm1, %v731_v10 }
 0x23d   :  { %v789_v11 = vpop.f32.mrf.mxu2  ;;  %v848_v12 = vpop.f32.mrf.mxu3 }
 0x23e   :  { %v790_v13 = vadd.f32 %v2897_v43, %v789_v11  ;;  %v849_v14 = vadd.f32 %v2902_v44, %v848_v12  ;;  %v673_v15 = vpop.f32.mrf.mxu0  ;;  %v732_v16 = vpop.f32.mrf.mxu1 }
 0x23f   :  { %v674_v17 = vadd.f32 %v2883_v35, %v673_v15  ;;  %v733_v18 = vadd.f32 %v2888_v36, %v732_v16 }
 0x240   :  { %803 = vst.msk [vmem:[#allocation2 + $0xa0] sm:$0xff] %vm253_vm1, %v790_v13 }
 0x241   :  { %862 = vst.msk [vmem:[#allocation2 + $0xe0] sm:$0xff] %vm253_vm1, %v849_v14 }
 0x242   :  { %686 = vst.msk [vmem:[#allocation2 + $0x28] sm:$0xff] %vm253_vm1, %v674_v17 }
 0x243   :  { %745 = vst.msk [vmem:[#allocation2 + $0x68] sm:$0xff] %vm253_vm1, %v733_v18 }
 0x245   :  { %v791_v19 = vpop.f32.mrf.mxu2  ;;  %v850_v20 = vpop.f32.mrf.mxu3 }
 0x246   :  { %v792_v21 = vadd.f32 %v2897_v43, %v791_v19  ;;  %v851_v22 = vadd.f32 %v2902_v44, %v850_v20  ;;  %v676_v23 = vpop.f32.mrf.mxu0  ;;  %v735_v24 = vpop.f32.mrf.mxu1 }
 0x247   :  { %v677_v25 = vadd.f32 %v2883_v35, %v676_v23  ;;  %v736_v26 = vadd.f32 %v2888_v36, %v735_v24 }
 0x248   :  { %804 = vst.msk [vmem:[#allocation2 + $0xa8] sm:$0xff] %vm253_vm1, %v792_v21 }
 0x249   :  { %863 = vst.msk [vmem:[#allocation2 + $0xe8] sm:$0xff] %vm253_vm1, %v851_v22 }
 0x24a   :  { %687 = vst.msk [vmem:[#allocation2 + $0x30] sm:$0xff] %vm253_vm1, %v677_v25 }
 0x24b   :  { %746 = vst.msk [vmem:[#allocation2 + $0x70] sm:$0xff] %vm253_vm1, %v736_v26 }
 0x24d   :  { %v794_v27 = vpop.f32.mrf.mxu2  ;;  %v853_v28 = vpop.f32.mrf.mxu3 }
 0x24e   :  { %v795_v29 = vadd.f32 %v2897_v43, %v794_v27  ;;  %v854_v30 = vadd.f32 %v2902_v44, %v853_v28  ;;  %v678_v31 = vpop.f32.mrf.mxu0  ;;  %v737_v32 = vpop.f32.mrf.mxu1 }
 0x24f   :  { %v679_v33 = vadd.f32 %v2883_v35, %v678_v31  ;;  %v738_v34 = vadd.f32 %v2888_v36, %v737_v32 }
 0x250   :  { %805 = vst.msk [vmem:[#allocation2 + $0xb0] sm:$0xff] %vm253_vm1, %v795_v29 }
 0x251   :  { %864 = vst.msk [vmem:[#allocation2 + $0xf0] sm:$0xff] %vm253_vm1, %v854_v30 }
 0x252   :  { %688 = vst.msk [vmem:[#allocation2 + $0x38] sm:$0xff] %vm253_vm1, %v679_v33 }
 0x253   :  { %747 = vst.msk [vmem:[#allocation2 + $0x78] sm:$0xff] %vm253_vm1, %v738_v34 }
 0x255   :  { %v796_v37 = vpop.f32.mrf.mxu2  ;;  %v855_v38 = vpop.f32.mrf.mxu3 }
 0x256   :  { %v797_v39 = vadd.f32 %v2897_v43, %v796_v37  ;;  %v856_v42 = vadd.f32 %v2902_v44, %v855_v38 }
 0x258   :  { %806 = vst.msk [vmem:[#allocation2 + $0xb8] sm:$0xff] %vm253_vm1, %v797_v39 }
 0x259   :  { %865 = vst.msk [vmem:[#allocation2 + $0xf8] sm:$0xff] %vm253_vm1, %v856_v42 }
 0x25a   :  { %2478 = dma.done.wait [#allocation9 + $0x1], 1024 }
 0x25b   :  { %2479 = vsyncadd [#allocation9 + $0x1], 4294966272  ;;  %v2964_v35 = vmov 0.0   ;;  %v2966_v36 = vmov 0   ;;  %s2968_s6 = smov 0  }
 0x25c LB: > { %v2265_v43 = vld [vmem:[#allocation6 + $0x18] sm:$0xff]  ;;  %v2267_v44 = vld [vmem:[#allocation6 + $0x20] sm:$0xff]  ;;  %v2269_v45 = vld [vmem:[#allocation6 + $0x8] sm:$0xff]  ;;  %s2051_s29 = sshll.u32 %s2506_s6, 3  ;;  %s2094_s8 = sshll.u32 %s2506_s6, 2  ;;  %s2506_s6 = sphi %s2968_s6, %s873_s6   ;;  %v2502_v36 = vphi %v2966_v36, %v1032_v36   ;;  %v2498_v35 = vphi %v2964_v35, %v991_v35  }
 0x25d   : > { %v2271_v40 = vld [vmem:[#allocation6 + $0x38] sm:$0xff]  ;;  %904 = vmatpush.bf16.msra.mxu0 %v2265_v43  ;;  %942 = vmatpush.bf16.msra.mxu1 %v2267_v44  ;;  %v2264_v41 = vld [vmem:[#allocation6] sm:$0xff]  ;;  %v2266_v46 = vld [vmem:[#allocation6 + $0x10] sm:$0xff]  ;;  %s877_s30 = scalar_lea.vmem [#allocation2], %s2051_s29  ;;  %s1034_s15 = scalar_lea.vmem [#allocation4], %s2094_s8 }
 0x25e   : > { %981 = vmatpush.bf16.msra.mxu2 %v2269_v45  ;;  %1018 = vmatpush.bf16.msra.mxu3 %v2271_v40  ;;  %v2268_v47 = vld [vmem:[#allocation6 + $0x28] sm:$0xff]  ;;  %v2270_v48 = vld [vmem:[#allocation6 + $0x30] sm:$0xff]  ;;  %s873_s6 = sadd.s32 1, %s2506_s6  }
 0x25f   : > { %p870_p1 = scmp.ge.s32.totalorder %s873_s6, 8  }
 0x260   : > { %v878_v49 = vld [vmem:[%s877_s30] sm:$0xff] }
 0x261   : > { %905 = vmatpush.bf16.msra.mxu0 %v2264_v41  ;;  %943 = vmatpush.bf16.msra.mxu1 %v2266_v46  ;;  %v2062_v50 = vld [vmem:[%s877_s30 + $0x40] sm:$0xff] }
 0x262   : > { %982 = vmatpush.bf16.msra.mxu2 %v2268_v47  ;;  %1019 = vmatpush.bf16.msra.mxu3 %v2270_v48  ;;  %v2073_v57 = vld [vmem:[%s877_s30 + $0x80] sm:$0xff] }
 0x263   : > { %v2084_v58 = vld [vmem:[%s877_s30 + $0xc0] sm:$0xff] }
 0x264   : > { %2060 = vmatmul.msk.bf16.vlgmr.msra.gmra.mxu0 %vm253_vm1, %v2502_v36  ;;  %2071 = vmatmul.msk.bf16.vlgmr.msra.gmra.mxu1 %vm253_vm1, %v2502_v36 }
 0x265   : > { %2082 = vmatmul.msk.bf16.vlgmr.msra.gmra.mxu2 %vm253_vm1, %v2502_v36  ;;  %2093 = vmatmul.msk.bf16.vlgmr.msra.gmra.mxu3 %vm253_vm1, %v2502_v36 }
 0x2e1   : > { %v907_v51 = vpop.f32.mrf.mxu0  ;;  %v945_v52 = vpop.f32.mrf.mxu1 }
 0x2e2   : > { %v911_v53 = vadd.f32 %v907_v51, %v878_v49  ;;  %v949_v54 = vadd.f32 %v2062_v50, %v945_v52 }
 0x2e4   : > { %v912_v55 = vmul.f32 0.5, %v911_v53  ;;  %v950_v56 = vmul.f32 0.5, %v949_v54 }
 0x2e6   : > { %2407 = vtanh.f32 %v912_v55 }
 0x2e7   : > { %2409 = vtanh.f32 %v950_v56 }
 0x2e8   : > { %v984_v59 = vpop.f32.mrf.mxu2  ;;  %v1021_v60 = vpop.f32.mrf.mxu3 }
 0x2e9   : > { %v988_v61 = vadd.f32 %v2073_v57, %v984_v59  ;;  %v1025_v62 = vadd.f32 %v2084_v58, %v1021_v60  ;;  %v909_v63 = vpop.f32.mrf.mxu0  ;;  %v947_v0 = vpop.f32.mrf.mxu1 }
 0x2eb   : > { %2411 = vtanh.f32 %v988_v61  ;;  %v1026_v1 = vmul.f32 0.5, %v1025_v62 }
 0x2ec   : > { %v2408_v2 = vpop.eup %2407 }
 0x2ed   : > { %v2410_v3 = vpop.eup %2409  ;;  %v914_v4 = vmul.f32 0.5, %v2408_v2  ;;  %2413 = vtanh.f32 %v1026_v1 }
 0x2ee   : > { %v952_v5 = vmul.f32 0.5, %v2410_v3 }
 0x2ef   : > { %v915_v6 = vadd.f32 0.5, %v914_v4 }
 0x2f0   : > { %v953_v7 = vadd.f32 0.5, %v952_v5  ;;  %v986_v8 = vpop.f32.mrf.mxu2  ;;  %v1023_v9 = vpop.f32.mrf.mxu3 }
 0x2f1   : > { %v2412_v10 = vpop.eup %2411 }
 0x2f2   : > { %v954_v11 = vmul.f32 %v2498_v35, %v953_v7  ;;  %v990_v12 = vmul.f32 %v2412_v10, %v915_v6 }
 0x2f3   : > { %v2414_v13 = vpop.eup %2413 }
 0x2f4   : > { %v991_v35 = vadd.f32 %v990_v12, %v954_v11   ;;  %v1028_v14 = vmul.f32 0.5, %v2414_v13 }
 0x2f6   : > { %2415 = vtanh.f32 %v991_v35  ;;  %v1029_v15 = vadd.f32 0.5, %v1028_v14 }
 0x2fc   : > { %v2416_v16 = vpop.eup %2415 }
 0x2fd   : > { %v1031_v17 = vmul.f32 %v2416_v16, %v1029_v15  ;;  %872 = sbr.rel (!%p870_p1) target bundleno = 604 (0x25c), region = 235 }
 0x2ff   : > { %v1032_v36 = vpack.c.bf16 %v1031_v17, %v1031_v17  }
 0x301   : > { %1036 = vst.msk [vmem:[%s1034_s15] sm:$0xf] %vm585_vm2, %v1032_v36 }
 0x302   :  { %2480 = dma.done.wait [#allocation9 + $0x2], 1024 }
 0x303   :  { %2481 = vsyncadd [#allocation9 + $0x2], 4294966272  ;;  %v2277_v18 = vld [vmem:[#allocation7 + $0x20] sm:$0xff]  ;;  %v2279_v19 = vld [vmem:[#allocation7 + $0x10] sm:$0xff] }
 0x304   :  { %v2281_v20 = vld [vmem:[#allocation7 + $0x30] sm:$0xff]  ;;  %v2283_v21 = vld [vmem:[#allocation7] sm:$0xff]  ;;  %1105 = vmatpush.bf16.msra.mxu0 %v2277_v18  ;;  %1164 = vmatpush.bf16.msra.mxu1 %v2279_v19  ;;  %v2276_v22 = vld [vmem:[#allocation7 + $0x28] sm:$0xff] }
 0x305   :  { %v2278_v23 = vld [vmem:[#allocation7 + $0x38] sm:$0xff]  ;;  %1223 = vmatpush.bf16.msra.mxu2 %v2281_v20  ;;  %1282 = vmatpush.bf16.msra.mxu3 %v2283_v21  ;;  %v2280_v24 = vld [vmem:[#allocation7 + $0x8] sm:$0xff]  ;;  %v3008_v30 = vld [vmem:[%s3223_s9] ss:$0 sm:$0xff] }
 0x306   :  { %v2282_v25 = vld [vmem:[#allocation7 + $0x18] sm:$0xff]  ;;  %v3013_v31 = vld [vmem:[%s3223_s9 + $0x1] ss:$0 sm:$0xff]  ;;  %v3022_v38 = vld [vmem:[%s3223_s9 + $0x2] ss:$0 sm:$0xff] }
 0x307   :  { %v3027_v39 = vld [vmem:[%s3223_s9 + $0x3] ss:$0 sm:$0xff] }
 0x308   :  { %v2272_v26 = vld [vmem:[#allocation4] sm:$0xff]  ;;  %1106 = vmatpush.bf16.msra.mxu0 %v2276_v22  ;;  %1165 = vmatpush.bf16.msra.mxu1 %v2278_v23  ;;  %v2273_v27 = vld [vmem:[#allocation4 + $0x8] sm:$0xff]  ;;  %v2274_v28 = vld [vmem:[#allocation4 + $0x10] sm:$0xff] }
 0x309   :  { %1224 = vmatpush.bf16.msra.mxu2 %v2280_v24  ;;  %1283 = vmatpush.bf16.msra.mxu3 %v2282_v25  ;;  %v2275_v29 = vld [vmem:[#allocation4 + $0x18] sm:$0xff] }
 0x30b   :  { %2119 = vmatmul.msk.bf16.vlgmr.msra.gmra.mxu0 %vm253_vm1, %v2272_v26  ;;  %2132 = vmatmul.msk.bf16.vlgmr.msra.gmra.mxu1 %vm253_vm1, %v2272_v26 }
 0x30c   :  { %2145 = vmatmul.msk.bf16.vlgmr.msra.gmra.mxu2 %vm253_vm1, %v2272_v26  ;;  %2158 = vmatmul.msk.bf16.vlgmr.msra.gmra.mxu3 %vm253_vm1, %v2272_v26 }
 0x31b   :  { %2120 = vmatmul.msk.bf16.gmra.mxu0 %vm253_vm1, %v2273_v27  ;;  %2133 = vmatmul.msk.bf16.gmra.mxu1 %vm253_vm1, %v2273_v27 }
 0x31c   :  { %2146 = vmatmul.msk.bf16.gmra.mxu2 %vm253_vm1, %v2273_v27  ;;  %2159 = vmatmul.msk.bf16.gmra.mxu3 %vm253_vm1, %v2273_v27 }
 0x32b   :  { %2121 = vmatmul.msk.bf16.gmra.mxu0 %vm253_vm1, %v2274_v28  ;;  %2134 = vmatmul.msk.bf16.gmra.mxu1 %vm253_vm1, %v2274_v28 }
 0x32c   :  { %2147 = vmatmul.msk.bf16.gmra.mxu2 %vm253_vm1, %v2274_v28  ;;  %2160 = vmatmul.msk.bf16.gmra.mxu3 %vm253_vm1, %v2274_v28 }
 0x33b   :  { %2122 = vmatmul.msk.bf16.gmra.mxu0 %vm253_vm1, %v2275_v29  ;;  %2135 = vmatmul.msk.bf16.gmra.mxu1 %vm253_vm1, %v2275_v29 }
 0x33c   :  { %2148 = vmatmul.msk.bf16.gmra.mxu2 %vm253_vm1, %v2275_v29  ;;  %2161 = vmatmul.msk.bf16.gmra.mxu3 %vm253_vm1, %v2275_v29 }
 0x388   :  { %v1108_v32 = vpop.f32.mrf.mxu0  ;;  %v1167_v33 = vpop.f32.mrf.mxu1 }
 0x389   :  { %v1109_v34 = vadd.f32 %v3008_v30, %v1108_v32  ;;  %v1168_v37 = vadd.f32 %v3013_v31, %v1167_v33 }
 0x38b   :  { %1128 = vst.msk [vmem:[#allocation2] sm:$0xff] %vm253_vm1, %v1109_v34 }
 0x38c   :  { %1187 = vst.msk [vmem:[#allocation2 + $0x40] sm:$0xff] %vm253_vm1, %v1168_v37 }
 0x38f   :  { %v1226_v42 = vpop.f32.mrf.mxu2  ;;  %v1285_v35 = vpop.f32.mrf.mxu3 }
 0x390   :  { %v1227_v36 = vadd.f32 %v3022_v38, %v1226_v42  ;;  %v1286_v43 = vadd.f32 %v3027_v39, %v1285_v35  ;;  %v1110_v44 = vpop.f32.mrf.mxu0  ;;  %v1169_v45 = vpop.f32.mrf.mxu1 }
 0x391   :  { %v1111_v40 = vadd.f32 %v3008_v30, %v1110_v44  ;;  %v1170_v41 = vadd.f32 %v3013_v31, %v1169_v45 }
 0x392   :  { %1246 = vst.msk [vmem:[#allocation2 + $0x80] sm:$0xff] %vm253_vm1, %v1227_v36 }
 0x393   :  { %1305 = vst.msk [vmem:[#allocation2 + $0xc0] sm:$0xff] %vm253_vm1, %v1286_v43 }
 0x394   :  { %1129 = vst.msk [vmem:[#allocation2 + $0x8] sm:$0xff] %vm253_vm1, %v1111_v40 }
 0x395   :  { %1188 = vst.msk [vmem:[#allocation2 + $0x48] sm:$0xff] %vm253_vm1, %v1170_v41 }
 0x397   :  { %v1228_v46 = vpop.f32.mrf.mxu2  ;;  %v1287_v47 = vpop.f32.mrf.mxu3 }
 0x398   :  { %v1229_v48 = vadd.f32 %v3022_v38, %v1228_v46  ;;  %v1288_v49 = vadd.f32 %v3027_v39, %v1287_v47  ;;  %v1113_v50 = vpop.f32.mrf.mxu0  ;;  %v1172_v51 = vpop.f32.mrf.mxu1 }
 0x399   :  { %v1114_v52 = vadd.f32 %v3008_v30, %v1113_v50  ;;  %v1173_v53 = vadd.f32 %v3013_v31, %v1172_v51 }
 0x39a   :  { %1247 = vst.msk [vmem:[#allocation2 + $0x88] sm:$0xff] %vm253_vm1, %v1229_v48 }
 0x39b   :  { %1306 = vst.msk [vmem:[#allocation2 + $0xc8] sm:$0xff] %vm253_vm1, %v1288_v49 }
 0x39c   :  { %1130 = vst.msk [vmem:[#allocation2 + $0x10] sm:$0xff] %vm253_vm1, %v1114_v52 }
 0x39d   :  { %1189 = vst.msk [vmem:[#allocation2 + $0x50] sm:$0xff] %vm253_vm1, %v1173_v53 }
 0x39f   :  { %v1231_v54 = vpop.f32.mrf.mxu2  ;;  %v1290_v55 = vpop.f32.mrf.mxu3 }
 0x3a0   :  { %v1232_v56 = vadd.f32 %v3022_v38, %v1231_v54  ;;  %v1291_v57 = vadd.f32 %v3027_v39, %v1290_v55  ;;  %v1115_v58 = vpop.f32.mrf.mxu0  ;;  %v1174_v59 = vpop.f32.mrf.mxu1 }
 0x3a1   :  { %v1116_v60 = vadd.f32 %v3008_v30, %v1115_v58  ;;  %v1175_v61 = vadd.f32 %v3013_v31, %v1174_v59 }
 0x3a2   :  { %1248 = vst.msk [vmem:[#allocation2 + $0x90] sm:$0xff] %vm253_vm1, %v1232_v56 }
 0x3a3   :  { %1307 = vst.msk [vmem:[#allocation2 + $0xd0] sm:$0xff] %vm253_vm1, %v1291_v57 }
 0x3a4   :  { %1131 = vst.msk [vmem:[#allocation2 + $0x18] sm:$0xff] %vm253_vm1, %v1116_v60 }
 0x3a5   :  { %1190 = vst.msk [vmem:[#allocation2 + $0x58] sm:$0xff] %vm253_vm1, %v1175_v61 }
 0x3a7   :  { %v1233_v62 = vpop.f32.mrf.mxu2  ;;  %v1292_v63 = vpop.f32.mrf.mxu3 }
 0x3a8   :  { %v1234_v0 = vadd.f32 %v3022_v38, %v1233_v62  ;;  %v1293_v1 = vadd.f32 %v3027_v39, %v1292_v63  ;;  %v1118_v2 = vpop.f32.mrf.mxu0  ;;  %v1177_v3 = vpop.f32.mrf.mxu1 }
 0x3a9   :  { %v1119_v4 = vadd.f32 %v3008_v30, %v1118_v2  ;;  %v1178_v5 = vadd.f32 %v3013_v31, %v1177_v3 }
 0x3aa   :  { %1249 = vst.msk [vmem:[#allocation2 + $0x98] sm:$0xff] %vm253_vm1, %v1234_v0 }
 0x3ab   :  { %1308 = vst.msk [vmem:[#allocation2 + $0xd8] sm:$0xff] %vm253_vm1, %v1293_v1 }
 0x3ac   :  { %1132 = vst.msk [vmem:[#allocation2 + $0x20] sm:$0xff] %vm253_vm1, %v1119_v4 }
 0x3ad   :  { %1191 = vst.msk [vmem:[#allocation2 + $0x60] sm:$0xff] %vm253_vm1, %v1178_v5 }
 0x3af   :  { %v1236_v6 = vpop.f32.mrf.mxu2  ;;  %v1295_v7 = vpop.f32.mrf.mxu3 }
 0x3b0   :  { %v1237_v8 = vadd.f32 %v3022_v38, %v1236_v6  ;;  %v1296_v9 = vadd.f32 %v3027_v39, %v1295_v7  ;;  %v1120_v10 = vpop.f32.mrf.mxu0  ;;  %v1179_v11 = vpop.f32.mrf.mxu1 }
 0x3b1   :  { %v1121_v12 = vadd.f32 %v3008_v30, %v1120_v10  ;;  %v1180_v13 = vadd.f32 %v3013_v31, %v1179_v11 }
 0x3b2   :  { %1250 = vst.msk [vmem:[#allocation2 + $0xa0] sm:$0xff] %vm253_vm1, %v1237_v8 }
 0x3b3   :  { %1309 = vst.msk [vmem:[#allocation2 + $0xe0] sm:$0xff] %vm253_vm1, %v1296_v9 }
 0x3b4   :  { %1133 = vst.msk [vmem:[#allocation2 + $0x28] sm:$0xff] %vm253_vm1, %v1121_v12 }
 0x3b5   :  { %1192 = vst.msk [vmem:[#allocation2 + $0x68] sm:$0xff] %vm253_vm1, %v1180_v13 }
 0x3b7   :  { %v1238_v14 = vpop.f32.mrf.mxu2  ;;  %v1297_v15 = vpop.f32.mrf.mxu3 }
 0x3b8   :  { %v1239_v16 = vadd.f32 %v3022_v38, %v1238_v14  ;;  %v1298_v17 = vadd.f32 %v3027_v39, %v1297_v15  ;;  %v1123_v18 = vpop.f32.mrf.mxu0  ;;  %v1182_v19 = vpop.f32.mrf.mxu1 }
 0x3b9   :  { %v1124_v20 = vadd.f32 %v3008_v30, %v1123_v18  ;;  %v1183_v21 = vadd.f32 %v3013_v31, %v1182_v19 }
 0x3ba   :  { %1251 = vst.msk [vmem:[#allocation2 + $0xa8] sm:$0xff] %vm253_vm1, %v1239_v16 }
 0x3bb   :  { %1310 = vst.msk [vmem:[#allocation2 + $0xe8] sm:$0xff] %vm253_vm1, %v1298_v17 }
 0x3bc   :  { %1134 = vst.msk [vmem:[#allocation2 + $0x30] sm:$0xff] %vm253_vm1, %v1124_v20 }
 0x3bd   :  { %1193 = vst.msk [vmem:[#allocation2 + $0x70] sm:$0xff] %vm253_vm1, %v1183_v21 }
 0x3bf   :  { %v1241_v22 = vpop.f32.mrf.mxu2  ;;  %v1300_v23 = vpop.f32.mrf.mxu3 }
 0x3c0   :  { %v1242_v24 = vadd.f32 %v3022_v38, %v1241_v22  ;;  %v1301_v25 = vadd.f32 %v3027_v39, %v1300_v23  ;;  %v1125_v26 = vpop.f32.mrf.mxu0  ;;  %v1184_v27 = vpop.f32.mrf.mxu1 }
 0x3c1   :  { %v1126_v28 = vadd.f32 %v3008_v30, %v1125_v26  ;;  %v1185_v29 = vadd.f32 %v3013_v31, %v1184_v27 }
 0x3c2   :  { %1252 = vst.msk [vmem:[#allocation2 + $0xb0] sm:$0xff] %vm253_vm1, %v1242_v24 }
 0x3c3   :  { %1311 = vst.msk [vmem:[#allocation2 + $0xf0] sm:$0xff] %vm253_vm1, %v1301_v25 }
 0x3c4   :  { %1135 = vst.msk [vmem:[#allocation2 + $0x38] sm:$0xff] %vm253_vm1, %v1126_v28 }
 0x3c5   :  { %1194 = vst.msk [vmem:[#allocation2 + $0x78] sm:$0xff] %vm253_vm1, %v1185_v29 }
 0x3c7   :  { %v1243_v32 = vpop.f32.mrf.mxu2  ;;  %v1302_v33 = vpop.f32.mrf.mxu3 }
 0x3c8   :  { %v1244_v34 = vadd.f32 %v3022_v38, %v1243_v32  ;;  %v1303_v37 = vadd.f32 %v3027_v39, %v1302_v33 }
 0x3ca   :  { %1253 = vst.msk [vmem:[#allocation2 + $0xb8] sm:$0xff] %vm253_vm1, %v1244_v34 }
 0x3cb   :  { %1312 = vst.msk [vmem:[#allocation2 + $0xf8] sm:$0xff] %vm253_vm1, %v1303_v37 }
 0x3cc   :  { %2482 = dma.done.wait [#allocation9 + $0x3], 1024 }
 0x3cd   :  { %2483 = vsyncadd [#allocation9 + $0x3], 4294966272  ;;  %v3089_v30 = vmov 0.0   ;;  %v3091_v31 = vmov 0   ;;  %s3093_s9 = smov 0  }
 0x3ce LB: > { %v2285_v38 = vld [vmem:[#allocation8] sm:$0xff]  ;;  %v2289_v42 = vld [vmem:[#allocation8 + $0x18] sm:$0xff]  ;;  %v2284_v36 = vld [vmem:[#allocation8 + $0x8] sm:$0xff]  ;;  %s2162_s4 = sshll.u32 %s2518_s9, 3  ;;  %s2205_s0 = sshll.u32 %s2518_s9, 2  ;;  %s2518_s9 = sphi %s3093_s9, %s1320_s9   ;;  %v2514_v31 = vphi %v3091_v31, %v1479_v31   ;;  %v2510_v30 = vphi %v3089_v30, %v1438_v30  }
 0x3cf   : > { %v2287_v39 = vld [vmem:[#allocation8 + $0x20] sm:$0xff]  ;;  %v2291_v35 = vld [vmem:[#allocation8 + $0x38] sm:$0xff]  ;;  %1351 = vmatpush.bf16.msra.mxu0 %v2285_v38  ;;  %v2286_v43 = vld [vmem:[#allocation8 + $0x10] sm:$0xff]  ;;  %1428 = vmatpush.bf16.msra.mxu2 %v2289_v42  ;;  %s1324_s21 = scalar_lea.vmem [#allocation2], %s2162_s4  ;;  %s1481_s22 = scalar_lea.vmem [#allocation3], %s2205_s0 }
 0x3d0   : > { %1389 = vmatpush.bf16.msra.mxu1 %v2287_v39  ;;  %1465 = vmatpush.bf16.msra.mxu3 %v2291_v35  ;;  %v2288_v44 = vld [vmem:[#allocation8 + $0x30] sm:$0xff]  ;;  %v2290_v45 = vld [vmem:[#allocation8 + $0x28] sm:$0xff]  ;;  %s1320_s9 = sadd.s32 1, %s2518_s9  }
 0x3d1   : > { %p1317_p2 = scmp.ge.s32.totalorder %s1320_s9, 8  }
 0x3d2   : > { %v1325_v40 = vld [vmem:[%s1324_s21] sm:$0xff]  ;;  %vm1551_vm3 = vcmask (%p1317_p2), 1041409   ;;  %vm1553_vm4 = vcmask (%p1317_p2), 1042434   ;;  %vm1555_vm5 = vcmask (%p1317_p2), 1043459   ;;  %vm1557_vm6 = vcmask (%p1317_p2), 1044484  }
 0x3d3   : > { %1352 = vmatpush.bf16.msra.mxu0 %v2284_v36  ;;  %1429 = vmatpush.bf16.msra.mxu2 %v2288_v44  ;;  %v2173_v41 = vld [vmem:[%s1324_s21 + $0x40] sm:$0xff]  ;;  %vm1559_vm7 = vcmask (%p1317_p2), 1045509   ;;  %vm1561_vm8 = vcmask (%p1317_p2), 1046534   ;;  %vm1563_vm9 = vcmask (%p1317_p2), 1047559   ;;  %vm1567_vm11 = vcmask (%p1317_p2), 64512  }
 0x3d4   : > { %1390 = vmatpush.bf16.msra.mxu1 %v2286_v43  ;;  %1466 = vmatpush.bf16.msra.mxu3 %v2290_v45  ;;  %v2184_v52 = vld [vmem:[%s1324_s21 + $0x80] sm:$0xff]  ;;  %v1532_v45 = vlaneseq (%p1317_p2)  ;;  %vm1733_vm12 = vcmask (%p1317_p2), 523264   ;;  %vm1750_vm13 = vcmask (%p1317_p2), 31744  }
 0x3d5   : > { %v2195_v53 = vld [vmem:[%s1324_s21 + $0xc0] sm:$0xff] }
 0x3d6   : > { %2171 = vmatmul.msk.bf16.vlgmr.msra.gmra.mxu0 %vm253_vm1, %v2514_v31  ;;  %2193 = vmatmul.msk.bf16.vlgmr.msra.gmra.mxu2 %vm253_vm1, %v2514_v31 }
 0x3d7   : > { %2182 = vmatmul.msk.bf16.vlgmr.msra.gmra.mxu1 %vm253_vm1, %v2514_v31  ;;  %2204 = vmatmul.msk.bf16.vlgmr.msra.gmra.mxu3 %vm253_vm1, %v2514_v31 }
 0x453   : > { %v1354_v46 = vpop.f32.mrf.mxu0 }
 0x454   : > { %v1392_v47 = vpop.f32.mrf.mxu1  ;;  %v1358_v48 = vadd.f32 %v1354_v46, %v1325_v40 }
 0x455   : > { %v1396_v49 = vadd.f32 %v2173_v41, %v1392_v47  ;;  %v1533_v41 = vand.u32 (%p1317_p2), 127, %v1532_v45 }
 0x456   : > { %v1359_v50 = vmul.f32 0.5, %v1358_v48 }
 0x457   : > { %v1397_v51 = vmul.f32 0.5, %v1396_v49  ;;  %vm1534_vm10 = vcmp.lt.s32.totalorder (%p1317_p2), %v1533_v41, 2 }
 0x458   : > { %2421 = vtanh.f32 %v1359_v50 }
 0x459   : > { %2423 = vtanh.f32 %v1397_v51  ;;  %v1431_v54 = vpop.f32.mrf.mxu2 }
 0x45a   : > { %v1468_v55 = vpop.f32.mrf.mxu3  ;;  %v1435_v56 = vadd.f32 %v2184_v52, %v1431_v54 }
 0x45b   : > { %v1472_v57 = vadd.f32 %v2195_v53, %v1468_v55  ;;  %v1356_v58 = vpop.f32.mrf.mxu0 }
 0x45c   : > { %v1394_v59 = vpop.f32.mrf.mxu1  ;;  %2425 = vtanh.f32 %v1435_v56 }
 0x45d   : > { %v1473_v60 = vmul.f32 0.5, %v1472_v57 }
 0x45e   : > { %v2422_v61 = vpop.eup %2421 }
 0x45f   : > { %v2424_v62 = vpop.eup %2423  ;;  %v1361_v63 = vmul.f32 0.5, %v2422_v61  ;;  %2427 = vtanh.f32 %v1473_v60 }
 0x460   : > { %v1399_v0 = vmul.f32 0.5, %v2424_v62 }
 0x461   : > { %v1362_v1 = vadd.f32 0.5, %v1361_v63  ;;  %v1433_v3 = vpop.f32.mrf.mxu2 }
 0x462   : > { %v1400_v2 = vadd.f32 0.5, %v1399_v0  ;;  %v1470_v4 = vpop.f32.mrf.mxu3  ;;  %v2426_v5 = vpop.eup %2425 }
 0x463   : > { %v1437_v7 = vmul.f32 %v2426_v5, %v1362_v1 }
 0x464   : > { %v1401_v6 = vmul.f32 %v2510_v30, %v1400_v2 }
 0x465   : > { %v2428_v8 = vpop.eup %2427 }
 0x466   : > { %v1438_v30 = vadd.f32 %v1437_v7, %v1401_v6   ;;  %v1475_v9 = vmul.f32 0.5, %v2428_v8 }
 0x468   : > { %2429 = vtanh.f32 %v1438_v30  ;;  %v1476_v10 = vadd.f32 0.5, %v1475_v9  ;;  %v1581_v9 = vshrl.u32 (%p1317_p2), %v1532_v45, 7 }
 0x46a   :  { %2433 = vset.pattern.permute.xlu0 (%p1317_p2), %v1581_v9  ;;  %2432 = vset.pattern.permute.xlu2 (%p1317_p2), %v1581_v9 }
 0x46b   :  { %2431 = vset.pattern.permute.xlu1 (%p1317_p2), %v1581_v9 }
 0x46e   : > { %v2430_v11 = vpop.eup %2429 }
 0x46f   : > { %v1478_v12 = vmul.f32 %v2430_v11, %v1476_v10  ;;  %1319 = sbr.rel (!%p1317_p2) target bundleno = 974 (0x3ce), region = 246 }
 0x471   : > { %v1479_v31 = vpack.c.bf16 %v1478_v12, %v1478_v12  }
 0x473   : > { %1483 = vst.msk [vmem:[%s1481_s22] sm:$0xf] %vm585_vm2, %v1479_v31 }
 0x47a   :  { %v3114_v13 = vld [vmem:[#allocation3] sm:$0xff]   ;;  %v3116_v14 = vld [vmem:[#allocation3 + $0x18] sm:$0xff]   ;;  %v3118_v15 = vld [vmem:[#allocation3 + $0x8] sm:$0xff]  }
 0x47b   :  { %v2300_v16 = vunpack.c.l.bf16 %v3114_v13  ;;  %v3122_v17 = vunpack.c.h.bf16 %v3116_v14  ;;  %v2304_v18 = vunpack.c.l.bf16 %v3118_v15  ;;  %v3125_v19 = vld [vmem:[#allocation3 + $0x10] sm:$0xff]   ;;  %v2301_v23 = vunpack.c.h.bf16 %v3114_v13 }
 0x47c   :  { %v2308_v20 = vunpack.c.l.bf16 %v3125_v19  ;;  %v2305_v24 = vunpack.c.h.bf16 %v3118_v15  ;;  %v2309_v26 = vunpack.c.h.bf16 %v3125_v19  ;;  %v2312_v31 = vunpack.c.l.bf16 %v3116_v14  ;;  %v2295_v19 = vld [vmem:[%s3226_s12 + $0x8] sm:$0xff]  ;;  %v2294_v14 = vld [vmem:[%s3226_s12] sm:$0xff] }
 0x47d   :  { %v1500_v21 = vmul.f32 %v3122_v17, %v2300_v16  ;;  %v1502_v22 = vmul.f32 %v3122_v17, %v2304_v18  ;;  %v1501_v32 = vmul.f32 %v3122_v17, %v2301_v23  ;;  %v1507_v42 = vmul.f32 %v3122_v17, %v3122_v17 }
 0x47e   :  { %v1504_v25 = vmul.f32 %v3122_v17, %v2308_v20  ;;  %v1503_v33 = vmul.f32 %v3122_v17, %v2305_v24  ;;  %v1505_v34 = vmul.f32 %v3122_v17, %v2309_v26  ;;  %v1506_v39 = vmul.f32 %v3122_v17, %v2312_v31 }
 0x47f   :  { %v1508_v27 = vsel %vm253_vm1, %v1500_v21, 0.0  ;;  %v1514_v28 = vsel %vm253_vm1, %v1502_v22, 0.0  ;;  %v1511_v37 = vsel %vm253_vm1, %v1501_v32, 0.0  ;;  %v1529_v36 = vsel %vm253_vm1, %v1507_v42, 0.0  ;;  %v2296_v42 = vld [vmem:[%s3226_s12 + $0x10] sm:$0xff] }
 0x480   :  { %1509 = vadd.xlane.f32.xlu0 %v1508_v27  ;;  %1515 = vadd.xlane.f32.xlu1 %v1514_v28  ;;  %v1520_v29 = vsel %vm253_vm1, %v1504_v25, 0.0  ;;  %v1517_v30 = vsel %vm253_vm1, %v1503_v33, 0.0  ;;  %v1523_v38 = vsel %vm253_vm1, %v1505_v34, 0.0  ;;  %v1526_v35 = vsel %vm253_vm1, %v1506_v39, 0.0  ;;  %v2297_v39 = vld [vmem:[%s3226_s12 + $0x18] sm:$0xff] }
 0x481   :  { %1521 = vadd.xlane.f32.xlu2 %v1520_v29  ;;  %1741 = vmatpush.bf16.msra.mxu1 %v2297_v39 }
 0x485   :  { %1742 = vmatpush.bf16.msra.mxu1 %v2296_v42 }
 0x488   :  { %1512 = vadd.xlane.f32.xlu0 %v1511_v37  ;;  %1518 = vadd.xlane.f32.xlu1 %v1517_v30  ;;  %v2293_v37 = vld [vmem:[%s3224_s10 + $0x8] sm:$0xff]  ;;  %v2292_v30 = vld [vmem:[%s3224_s10] sm:$0xff] }
 0x489   :  { %1524 = vadd.xlane.f32.xlu2 %v1523_v38  ;;  %1688 = vmatpush.bf16.msra.mxu0 %v2293_v37 }
 0x48a   :  { %1743 = vmatpush.bf16.msra.mxu1 %v2295_v19 }
 0x48d   :  { %1689 = vmatpush.bf16.msra.mxu0 %v2292_v30 }
 0x48e   :  { %1744 = vmatpush.bf16.msra.mxu1 %v2294_v14 }
 0x490   :  { %1527 = vadd.xlane.f32.xlu0 %v1526_v35  ;;  %1530 = vadd.xlane.f32.xlu1 %v1529_v36 }
 0x4f3   :  { %v1510_v43 = vpop.xlane.xlu0 %1509  ;;  %v1516_v44 = vpop.xlane.xlu1 %1515 }
 0x4f4   :  { %v1522_v40 = vpop.xlane.xlu2 %1521  ;;  %v1543_v48 = vperm.slane %v1510_v43, %v1533_v41  ;;  %v1545_v51 = vperm.slane %v1516_v44, %v1533_v41 }
 0x4f5   :  { %v1547_v55 = vperm.slane %v1522_v40, %v1533_v41 }
 0x4fb   :  { %v1513_v46 = vpop.xlane.xlu0 %1512  ;;  %v1519_v47 = vpop.xlane.xlu1 %1518 }
 0x4fc   :  { %v1544_v49 = vperm.slane %v1513_v46, %v1533_v41  ;;  %v1546_v50 = vperm.slane %v1519_v47, %v1533_v41  ;;  %v1525_v53 = vpop.xlane.xlu2 %1524 }
 0x4fd   :  { %v1548_v57 = vperm.slane %v1525_v53, %v1533_v41 }
 0x4fe   :  { %v1552_v52 = vsel %vm1551_vm3, %v1544_v49, %v1543_v48 }
 0x4ff   :  { %v1554_v54 = vsel %vm1553_vm4, %v1545_v51, %v1552_v52 }
 0x500   :  { %v1556_v56 = vsel %vm1555_vm5, %v1546_v50, %v1554_v54 }
 0x501   :  { %v1558_v58 = vsel %vm1557_vm6, %v1547_v55, %v1556_v56 }
 0x502   :  { %v1560_v63 = vsel %vm1559_vm7, %v1548_v57, %v1558_v58 }
 0x503   :  { %v1528_v59 = vpop.xlane.xlu0 %1527  ;;  %v1531_v60 = vpop.xlane.xlu1 %1530 }
 0x504   :  { %v1549_v61 = vperm.slane %v1528_v59, %v1533_v41  ;;  %v1550_v62 = vperm.slane %v1531_v60, %v1533_v41 }
 0x506   :  { %v1562_v0 = vsel %vm1561_vm8, %v1549_v61, %v1560_v63 }
 0x507   :  { %v1564_v1 = vsel %vm1563_vm9, %v1550_v62, %v1562_v0 }
 0x508   :  { %v1566_v2 = vsel %vm1534_vm10, %v1564_v1, -1e+30  ;;  %v2435_v1 = vld [vmem:[%s3227_s13] ss:$0 sm:$0xff] }
 0x509   :  { %v1568_v3 = vsel %vm1567_vm11, %v1566_v2, -inf }
 0x50a   :  { %1569 = vmax.xlane.f32.xlu2 %v1568_v3 }
 0x57d   :  { %v1570_v4 = vpop.xlane.xlu2 %1569 }
 0x57e   :  { %v1571_v5 = vsub.f32 %v1566_v2, %v1570_v4 }
 0x580   :  { %v1572_v6 = vmul.f32 1.442695, %v1571_v5 }
 0x582   :  { %2436 = vpow2.f32 %v1572_v6 }
 0x588   :  { %v2437_v7 = vpop.eup %2436 }
 0x589   :  { %v1574_v8 = vsel %vm1567_vm11, %v2437_v7, 0.0 }
 0x58a   :  { %1575 = vadd.xlane.f32.xlu0 %v1574_v8 }
 0x5fd   :  { %v1576_v10 = vpop.xlane.xlu0 %1575 }
 0x5fe   :  { %2438 = vrcp.f32 %v1576_v10 }
 0x604   :  { %v2439_v11 = vpop.eup %2438 }
 0x605   :  { %v1578_v12 = vmul.f32 %v2439_v11, %v2437_v7 }
 0x607   :  { %v1593_v21 = vperm.slane %v1578_v12, 2  ;;  %v1586_v22 = vperm.slane %v1578_v12, 1  ;;  %v1579_v25 = vperm.slane %v1578_v12, 0  ;;  %v1600_v27 = vperm.slane %v1578_v12, 3 }
 0x608   :  { %v1607_v28 = vperm.slane %v1578_v12, 4  ;;  %v1614_v29 = vperm.slane %v1578_v12, 5  ;;  %v1621_v32 = vperm.slane %v1578_v12, 6  ;;  %v1628_v33 = vperm.slane %v1578_v12, 7 }
 0x609   :  { %1598 = vperm.xlu0 %2433, %v1593_v21   ;;  %1591 = vperm.xlu2 %2432, %v1586_v22  }
 0x60a   :  { %1584 = vperm.xlu1 %2431, %v1579_v25  }
 0x611   :  { %1605 = vperm.xlu2 %2432, %v1600_v27  }
 0x612   :  { %1612 = vperm.xlu1 %2431, %v1607_v28  }
 0x619   :  { %1619 = vperm.xlu2 %2432, %v1614_v29  }
 0x61a   :  { %1626 = vperm.xlu1 %2431, %v1621_v32  }
 0x621   :  { %1633 = vperm.xlu2 %2432, %v1628_v33  }
 0x663   :  { %v1592_v34 = vpop.permute.xlu2 %1591 }
 0x664   :  { %v1636_v35 = vmul.f32 %v2301_v23, %v1592_v34 }
 0x666   :  { %v1644_v45 = vsel %vm253_vm1, %v1636_v35, 0.0 }
 0x66b   :  { %v1606_v38 = vpop.permute.xlu2 %1605 }
 0x66c   :  { %v1638_v48 = vmul.f32 %v2305_v24, %v1606_v38 }
 0x673   :  { %v1620_v46 = vpop.permute.xlu2 %1619 }
 0x67b   :  { %v1599_v36 = vpop.permute.xlu0 %1598  ;;  %v1634_v53 = vpop.permute.xlu2 %1633 }
 0x67c   :  { %v1585_v43 = vpop.permute.xlu1 %1584  ;;  %v1637_v40 = vmul.f32 %v2304_v18, %v1599_v36  ;;  %v1640_v18 = vmul.f32 %v2309_v26, %v1620_v46  ;;  %v1642_v24 = vmul.f32 %v3122_v17, %v1634_v53  ;;  %v2434_v17 = vld [vmem:[%s3225_s11] ss:$0 sm:$0xff] }
 0x67d   :  { %v1635_v44 = vmul.f32 %v2300_v16, %v1585_v43  ;;  %v1648_v16 = vsel %vm253_vm1, %v1638_v48, 0.0 }
 0x67e   :  { %v1646_v23 = vsel %vm253_vm1, %v1637_v40, 0.0  ;;  %v1652_v15 = vsel %vm253_vm1, %v1640_v18, 0.0  ;;  %v1656_v59 = vsel %vm253_vm1, %v1642_v24, 0.0 }
 0x67f   :  { %v1643_v41 = vsel %vm253_vm1, %v1635_v44, 0.0 }
 0x680   :  { %v1645_v47 = vadd.f32 %v1644_v45, %v1643_v41 }
 0x682   :  { %v1647_v49 = vadd.f32 %v1646_v23, %v1645_v47 }
 0x684   :  { %v1613_v50 = vpop.permute.xlu1 %1612  ;;  %v1649_v52 = vadd.f32 %v1648_v16, %v1647_v49 }
 0x685   :  { %v1639_v13 = vmul.f32 %v2308_v20, %v1613_v50 }
 0x687   :  { %v1650_v51 = vsel %vm253_vm1, %v1639_v13, 0.0 }
 0x688   :  { %v1651_v54 = vadd.f32 %v1650_v51, %v1649_v52 }
 0x68a   :  { %v1653_v57 = vadd.f32 %v1652_v15, %v1651_v54 }
 0x68c   :  { %v1627_v55 = vpop.permute.xlu1 %1626 }
 0x68d   :  { %v1641_v56 = vmul.f32 %v2312_v31, %v1627_v55 }
 0x68f   :  { %v1654_v20 = vsel %vm253_vm1, %v1641_v56, 0.0 }
 0x690   :  { %v1655_v58 = vadd.f32 %v1654_v20, %v1653_v57 }
 0x692   :  { %v1657_v60 = vadd.f32 %v1656_v59, %v1655_v58 }
 0x694   :  { %v1658_v61 = vpack.c.bf16 %v1657_v60, %v1657_v60 }
 0x696   :  { %2214 = vmatmul.msk.bf16.vlgmr.msra.gmra.mxu0 %vm253_vm1, %v1658_v61 }
 0x713   :  { %v1691_v26 = vpop.f32.mrf.mxu0 }
 0x714   :  { %v1692_v31 = vadd.f32 %v2434_v17, %v1691_v26 }
 0x716   :  { %v1695_v62 = vmax.f32 %v1692_v31, 0.0 }
 0x718   :  { %v1696_v63 = vpack.c.bf16 %v1695_v62, %v1695_v62 }
 0x71a   :  { %2231 = vmatmul.msk.bf16.vlgmr.msra.gmra.mxu1 %vm1733_vm12, %v1696_v63 }
 0x71b   :  { %v1693_v0 = vpop.f32.mrf.mxu0 }
 0x797   :  { %v1746_v2 = vpop.f32.mrf.mxu1 }
 0x798   :  { %v1747_v3 = vadd.f32 %v2435_v1, %v1746_v2 }
 0x79a   :  { %1751 = vst.msk [vmem:[%s3228_s14] sm:$0xff] %vm1750_vm13, %v1747_v3 }
 0x79f   :  { %v1748_v4 = vpop.f32.mrf.mxu1 }
 0x7a0   :  { %1756 = vsyncmov [#allocation9] }
 0x7a3   :  { %s1757_s11 = vpop.sfrf %1756 }
 0x7a4   :  { %p2232_p3 = scmp.ne.s32.totalorder %s1757_s11, 0 }
 0x7a6   :  { %1761 = shalt.err (%p2232_p3)  }
 0x7a7   :  { %1763 = vsyncmov [#allocation9 + $0x1] }
 0x7aa   :  { %s1764_s7 = vpop.sfrf %1763 }
 0x7ab   :  { %p2233_p4 = scmp.ne.s32.totalorder %s1764_s7, 0 }
 0x7ad   :  { %1768 = shalt.err (%p2233_p4)  }
 0x7ae   :  { %1770 = vsyncmov [#allocation9 + $0x2] }
 0x7b1   :  { %s1771_s18 = vpop.sfrf %1770 }
 0x7b2   :  { %p2234_p5 = scmp.ne.s32.totalorder %s1771_s18, 0 }
 0x7b4   :  { %1775 = shalt.err (%p2234_p5)  }
 0x7b5   :  { %1777 = vsyncmov [#allocation9 + $0x3] }
 0x7b8   :  { %s1778_s13 = vpop.sfrf %1777 }
 0x7b9   :  { %p2235_p6 = scmp.ne.s32.totalorder %s1778_s13, 0 }
 0x7bb   :  { %1782 = shalt.err (%p2235_p6)  }

</bundles_post_ra>
